<compile_context>
chip_gen: v6e
topology: v6e:2x2x1
jax: 0.10.0
libtpu: 0.0.40
codegen_flags: <defaults>
</compile_context>

<pallas_src>
import functools

import jax
import jax.numpy as jnp
from jax.experimental import pallas as pl
from jax.experimental.pallas import tpu as pltpu


def _round_up(x: int, m: int) -> int:
    return ((x + m - 1) // m) * m


def _encoder_kernel(x_ref, w1_ref, b1_ref, w2_ref, b2_ref, o_ref):
    # x_ref : (TM, 1080)   w1_ref: (1080, 512)  b1_ref: (1, 512)
    # w2_ref: (512, 256)   b2_ref: (1, 256)     o_ref : (TM, 256)
    x = x_ref[...]

    # Layer 1: Linear + ReLU (f32 accumulation on the MXU, bias in f32 epilogue)
    h = jnp.dot(x, w1_ref[...], preferred_element_type=jnp.float32)
    h = jnp.maximum(h + b1_ref[...].astype(jnp.float32), 0.0)
    # (eval-mode dropout == identity)

    # Layer 2: Linear + ReLU. Feed the MXU in the original input dtype
    # (bf16 inputs -> bf16 MXU path with f32 accumulation).
    h = h.astype(x.dtype)
    out = jnp.dot(h, w2_ref[...], preferred_element_type=jnp.float32)
    out = jnp.maximum(out + b2_ref[...].astype(jnp.float32), 0.0)

    o_ref[...] = out.astype(o_ref.dtype)


@functools.partial(jax.jit, static_argnames=("tm",))
def encoder_1d_forward(x, w1_t, b1, w2_t, b2, *, tm: int = 256):
    """Fused Encoder_1d forward.

    x    : (B, 1080)
    w1_t : (1080, 512)   (transpose of PyTorch weight)
    b1   : (512,)
    w2_t : (512, 256)
    b2   : (256,)
    returns (B, 256)
    """
    B, d_in = x.shape
    d_hidden = w1_t.shape[1]
    d_out = w2_t.shape[1]

    # Batch tile: multiple of 8 (sublane), capped by the (padded) batch size.
    tm = min(tm, _round_up(B, 8))
    b_pad = _round_up(B, tm)
    if b_pad != B:
        x = jnp.pad(x, ((0, b_pad - B), (0, 0)))

    grid = (b_pad // tm,)

    out = pl.pallas_call(
        _encoder_kernel,
        out_shape=jax.ShapeDtypeStruct((b_pad, d_out), x.dtype),
        grid_spec=pltpu.PrefetchScalarGridSpec(
            num_scalar_prefetch=0,
            grid=grid,
            in_specs=[
                # activations: tiled along batch (pipelined)
                pl.BlockSpec((tm, d_in), lambda i: (i, 0)),
                # weights / biases: constant block index -> VMEM-resident
                pl.BlockSpec((d_in, d_hidden), lambda i: (0, 0)),
                pl.BlockSpec((1, d_hidden), lambda i: (0, 0)),
                pl.BlockSpec((d_hidden, d_out), lambda i: (0, 0)),
                pl.BlockSpec((1, d_out), lambda i: (0, 0)),
            ],
            out_specs=pl.BlockSpec((tm, d_out), lambda i: (i, 0)),
        ),
        compiler_params=pltpu.CompilerParams(
            dimension_semantics=("parallel",),   # batch tiles are independent
            vmem_limit_bytes=64 << 20,           # safe on v5e/v6e/v7x
        ),
    )(x, w1_t, b1.reshape(1, d_hidden), w2_t, b2.reshape(1, d_out))

    return out[:B]


if __name__ == "__main__":
    # Small batch; feature sizes are fixed by the module (1080 -> 512 -> 256).
    batch = 16
    d_in, d_hidden, d_out = 1080, 512, 256

    key = jax.random.PRNGKey(0)
    kx, kw1, kb1, kw2, kb2 = jax.random.split(key, 5)

    x = jax.random.normal(kx, (batch, d_in), dtype=jnp.float32)

    # nn.Linear-style init: U(-1/sqrt(fan_in), 1/sqrt(fan_in)).
    bound1 = 1.0 / jnp.sqrt(jnp.float32(d_in))
    w1 = jax.random.uniform(kw1, (d_hidden, d_in), jnp.float32, -bound1, bound1)
    b1 = jax.random.uniform(kb1, (d_hidden,), jnp.float32, -bound1, bound1)

    bound2 = 1.0 / jnp.sqrt(jnp.float32(d_hidden))
    w2 = jax.random.uniform(kw2, (d_out, d_hidden), jnp.float32, -bound2, bound2)
    b2 = jax.random.uniform(kb2, (d_out,), jnp.float32, -bound2, bound2)

    # Store weights transposed so the kernel computes x @ W^T directly.
    w1_t = w1.T
    w2_t = w2.T

    out = encoder_1d_forward(x, w1_t, b1, w2_t, b2)
    jax.block_until_ready(out)

    # Plain-JAX reference (eval mode: dropout = identity).
    h_ref = jnp.maximum(x @ w1_t + b1, 0.0)
    ref = jnp.maximum(h_ref @ w2_t + b2, 0.0)

    assert out.shape == (batch, d_out)
    assert jnp.allclose(out, ref, atol=1e-2, rtol=1e-2), (
        float(jnp.max(jnp.abs(out - ref)))
    )

    print("KERNEL_OK")
</pallas_src>

<mosaic_0001>
module attributes {stable_mosaic.version = 11 : i64} {
  func.func @_encoder_kernel(%arg0: i32, %arg1: memref<16x1080xf32, #tpu.memory_space<vmem>>, %arg2: memref<1080x512xf32, #tpu.memory_space<vmem>>, %arg3: memref<1x512xf32, #tpu.memory_space<vmem>>, %arg4: memref<512x256xf32, #tpu.memory_space<vmem>>, %arg5: memref<1x256xf32, #tpu.memory_space<vmem>>, %arg6: memref<16x256xf32, #tpu.memory_space<vmem>>) attributes {dimension_semantics = [#tpu.dimension_semantics<parallel>], iteration_bounds = array<i64: 1>, scalar_prefetch = 0 : i64, scratch_operands = 0 : i64, tpu.core_type = #tpu.core_type<tc>, window_params = [{transform_indices = @transform_0, window_bounds = array<i64: 16, 1080>}, {pipeline_mode = #tpu.pipeline_mode<synchronous>, transform_indices = @transform_1, window_bounds = array<i64: 1080, 512>}, {pipeline_mode = #tpu.pipeline_mode<synchronous>, transform_indices = @transform_2, window_bounds = array<i64: 1, 512>}, {pipeline_mode = #tpu.pipeline_mode<synchronous>, transform_indices = @transform_3, window_bounds = array<i64: 512, 256>}, {pipeline_mode = #tpu.pipeline_mode<synchronous>, transform_indices = @transform_4, window_bounds = array<i64: 1, 256>}, {transform_indices = @transform_5, window_bounds = array<i64: 16, 256>}]} {
    %c0 = arith.constant 0 : index
    %c0_0 = arith.constant 0 : index
    %0 = vector.load %arg1[%c0, %c0_0] : memref<16x1080xf32, #tpu.memory_space<vmem>>, vector<16x1080xf32>
    %c0_1 = arith.constant 0 : index
    %c0_2 = arith.constant 0 : index
    %1 = vector.load %arg2[%c0_1, %c0_2] : memref<1080x512xf32, #tpu.memory_space<vmem>>, vector<1080x512xf32>
    %cst = arith.constant dense<0.000000e+00> : vector<16x512xf32>
    %2 = tpu.matmul %0, %1, %cst {dimension_numbers = #tpu.dot_dimension_numbers<[1], [0], [0], [1], [0, 0, 1, 1], [], []>} : vector<16x1080xf32>, vector<1080x512xf32>, vector<16x512xf32> -> vector<16x512xf32>
    %c0_3 = arith.constant 0 : index
    %c0_4 = arith.constant 0 : index
    %3 = vector.load %arg3[%c0_3, %c0_4] : memref<1x512xf32, #tpu.memory_space<vmem>>, vector<1x512xf32>
    %4 = vector.broadcast %3 : vector<1x512xf32> to vector<16x512xf32>
    %5 = arith.addf %2, %4 : vector<16x512xf32>
    %cst_5 = arith.constant 0.000000e+00 : f32
    %6 = vector.broadcast %cst_5 : f32 to vector<16x512xf32>
    %7 = arith.maximumf %5, %6 : vector<16x512xf32>
    %c0_6 = arith.constant 0 : index
    %c0_7 = arith.constant 0 : index
    %8 = vector.load %arg4[%c0_6, %c0_7] : memref<512x256xf32, #tpu.memory_space<vmem>>, vector<512x256xf32>
    %cst_8 = arith.constant dense<0.000000e+00> : vector<16x256xf32>
    %9 = tpu.matmul %7, %8, %cst_8 {dimension_numbers = #tpu.dot_dimension_numbers<[1], [0], [0], [1], [0, 0, 1, 1], [], []>} : vector<16x512xf32>, vector<512x256xf32>, vector<16x256xf32> -> vector<16x256xf32>
    %c0_9 = arith.constant 0 : index
    %c0_10 = arith.constant 0 : index
    %10 = vector.load %arg5[%c0_9, %c0_10] : memref<1x256xf32, #tpu.memory_space<vmem>>, vector<1x256xf32>
    %11 = vector.broadcast %10 : vector<1x256xf32> to vector<16x256xf32>
    %12 = arith.addf %9, %11 : vector<16x256xf32>
    %cst_11 = arith.constant 0.000000e+00 : f32
    %13 = vector.broadcast %cst_11 : f32 to vector<16x256xf32>
    %14 = arith.maximumf %12, %13 : vector<16x256xf32>
    %c0_12 = arith.constant 0 : index
    %c0_13 = arith.constant 0 : index
    %15 = vector.load %arg6[%c0_12, %c0_13] : memref<16x256xf32, #tpu.memory_space<vmem>>, vector<16x256xf32>
    tpu.vector_store %arg6[%c0_12, %c0_13], %14 {strides = array<i32>} : memref<16x256xf32, #tpu.memory_space<vmem>>, vector<16x256xf32>,
    return
  }
  func.func @transform_0(%arg0: i32) -> (i32, i32) {
    %c0_i32 = arith.constant 0 : i32
    %c0_i32_0 = arith.constant 0 : i32
    return %arg0, %c0_i32 : i32, i32
  }
  func.func @transform_1(%arg0: i32) -> (i32, i32) {
    %c0_i32 = arith.constant 0 : i32
    %c0_i32_0 = arith.constant 0 : i32
    %c0_i32_1 = arith.constant 0 : i32
    return %c0_i32, %c0_i32_0 : i32, i32
  }
  func.func @transform_2(%arg0: i32) -> (i32, i32) {
    %c0_i32 = arith.constant 0 : i32
    %c0_i32_0 = arith.constant 0 : i32
    %c0_i32_1 = arith.constant 0 : i32
    return %c0_i32, %c0_i32_0 : i32, i32
  }
  func.func @transform_3(%arg0: i32) -> (i32, i32) {
    %c0_i32 = arith.constant 0 : i32
    %c0_i32_0 = arith.constant 0 : i32
    %c0_i32_1 = arith.constant 0 : i32
    return %c0_i32, %c0_i32_0 : i32, i32
  }
  func.func @transform_4(%arg0: i32) -> (i32, i32) {
    %c0_i32 = arith.constant 0 : i32
    %c0_i32_0 = arith.constant 0 : i32
    %c0_i32_1 = arith.constant 0 : i32
    return %c0_i32, %c0_i32_0 : i32, i32
  }
  func.func @transform_5(%arg0: i32) -> (i32, i32) {
    %c0_i32 = arith.constant 0 : i32
    %c0_i32_0 = arith.constant 0 : i32
    return %arg0, %c0_i32 : i32, i32
  }
}

</mosaic_0001>

<bundles_post_ra>
// kernel: encoder_1d_forward.1
= control target key start
LH: loop header
LB: loop body
LE: loop exit
PB: predicated region body
PF: predicated region fallthrough
CT: control target
= control target key end

     0   :  { %10 = vsyncpa [#allocation3], 0  ;;  %s2047_s0 = inlined_call_operand.hbm [shape: f32[16,1080], index: 0, kind: input, shape index: {}]   ;;  %s2048_s1 = inlined_call_operand.hbm [shape: f32[1080,512], index: 1, kind: input, shape index: {}]   ;;  %s2049_s2 = inlined_call_operand.hbm [shape: f32[1,512], index: 2, kind: input, shape index: {}]   ;;  %s2050_s3 = inlined_call_operand.hbm [shape: f32[512,256], index: 3, kind: input, shape index: {}]   ;;  %s2051_s4 = inlined_call_operand.hbm [shape: f32[1,256], index: 4, kind: input, shape index: {}]   ;;  %s2052_s5 = inlined_call_operand.hbm [shape: f32[16,256], index: 5, kind: output, shape index: {}]  }
   0x1   :  { %11 = vsyncpa [#allocation6], 0 }
   0x2   :  { %12 = vsyncpa [#allocation9], 0 }
   0x3   :  { %13 = vsyncpa [#allocation4], 0  ;;  %s1934_s18 = smov [#allocation5]  }
   0x4   :  { %s31_s19 = sshll.u32 %s1934_s18, 4  ;;  %s32_s19 = int_to_ptr.vmem [resolvable:$true] %s31_s19 }
   0x5   :  { %s1814_s20 = scalar_lea.vmem %s32_s19, 69120  ;;  %p1819_p1 = scmp.lt.s32.totalorder %s32_s19, %s32_s19 }
   0x6   :  { %p1815_p0 = scmp.ne.s32.totalorder %s32_s19, %s1814_s20  ;;  %p1820_p2 = scmp.lt.s32.totalorder %s1814_s20, %s1814_s20 }
   0x8   :  { %p1821_p3 = por %p1820_p2, %p1819_p1 }
   0xa   :  { %p1822_p4 = pnand %p1821_p3, %p1815_p0 }
   0xc   :  { %1825 = shalt.err (!%p1822_p4)
}
   0xd   :  { %s1935_s21 = smov 512   ;;  %s1936_s22 = smov 32  }
   0xe   :  { %37 = dma.hbm_to_vmem [thread:$0]  %s2048_s1, 69120, %s32_s19, [#allocation6], %s1935_s21, %s1935_s21, %s1936_s22  }
   0xf   :  { %s1937_s25 = smov [#allocation8]  }
  0x10   :  { %s53_s26 = sshll.u32 %s1937_s25, 4  ;;  %s54_s26 = int_to_ptr.vmem [resolvable:$true] %s53_s26 }
  0x11   :  { %s1834_s27 = scalar_lea.vmem %s54_s26, 16384  ;;  %p1839_p6 = scmp.lt.s32.totalorder %s54_s26, %s54_s26 }
  0x12   :  { %p1835_p5 = scmp.ne.s32.totalorder %s54_s26, %s1834_s27  ;;  %p1840_p7 = scmp.lt.s32.totalorder %s1834_s27, %s1834_s27 }
  0x14   :  { %p1841_p8 = por %p1840_p7, %p1839_p6 }
  0x16   :  { %p1842_p9 = pnand %p1841_p8, %p1835_p5 }
  0x18   :  { %1845 = shalt.err (!%p1842_p9)
}
  0x19   :  { %s1938_s28 = smov 256   ;;  %s1939_s29 = smov 16  }
  0x1a   :  { %59 = dma.hbm_to_vmem [thread:$0]  %s2050_s3, 16384, %s54_s26, [#allocation9], %s1938_s28, %s1938_s28, %s1939_s29  }
  0x1b   :  { %s1940_s1 = smov [#allocation2]  }
  0x1c   :  { %s19_s7 = sshll.u32 %s1940_s1, 4  ;;  %s20_s7 = int_to_ptr.vmem [resolvable:$true] %s19_s7 }
  0x1d   :  { %s1854_s8 = scalar_lea.vmem %s20_s7, 2304  ;;  %p1859_p11 = scmp.lt.s32.totalorder %s20_s7, %s20_s7 }
  0x1e   :  { %p1855_p10 = scmp.ne.s32.totalorder %s20_s7, %s1854_s8  ;;  %p1860_p12 = scmp.lt.s32.totalorder %s1854_s8, %s1854_s8 }
  0x20   :  { %p1861_p13 = por %p1860_p12, %p1859_p11 }
  0x22   :  { %p1862_p0 = pnand %p1861_p13, %p1855_p10 }
  0x24   :  { %1865 = shalt.err (!%p1862_p0)
}
  0x25   :  { %s1941_s9 = smov 1152   ;;  %s1942_s10 = smov 72  }
  0x26   :  { %25 = dma.hbm_to_vmem [thread:$0]  %s2047_s0, 2304, %s20_s7, [#allocation3], %s1941_s9, %s1941_s9, %s1942_s10  }
  0x27   :  { %s1943_s13 = smov [#allocation7]   ;;  %s1944_s3 = smov [#allocation10]  }
  0x28   :  { %s44_s14 = sshll.u32 %s1943_s13, 4  ;;  %s66_s15 = sshll.u32 %s1944_s3, 4  ;;  %s45_s14 = int_to_ptr.vmem [resolvable:$true] %s44_s14  ;;  %s67_s15 = int_to_ptr.vmem [resolvable:$true] %s66_s15 }
  0x29   :  { %s1874_s16 = scalar_lea.vmem %s45_s14, 64  ;;  %p1879_p2 = scmp.lt.s32.totalorder %s45_s14, %s45_s14 }
  0x2a   :  { %p1875_p1 = scmp.ne.s32.totalorder %s45_s14, %s1874_s16  ;;  %p1880_p3 = scmp.lt.s32.totalorder %s1874_s16, %s1874_s16 }
  0x2c   :  { %p1881_p4 = por %p1880_p3, %p1879_p2 }
  0x2e   :  { %p1882_p5 = pnand %p1881_p4, %p1875_p1 }
  0x30   :  { %1885 = shalt.err (!%p1882_p5)
}
  0x31   :  { %47 = dma.hbm_to_vmem [thread:$0]  %s2049_s2, 64, %s45_s14, [#allocation6]  }
  0x32   :  { %s1894_s19 = scalar_lea.vmem %s67_s15, 32  ;;  %p1899_p7 = scmp.lt.s32.totalorder %s67_s15, %s67_s15 }
  0x33   :  { %p1895_p6 = scmp.ne.s32.totalorder %s67_s15, %s1894_s19  ;;  %p1900_p8 = scmp.lt.s32.totalorder %s1894_s19, %s1894_s19 }
  0x35   :  { %p1901_p9 = por %p1900_p8, %p1899_p7 }
  0x37   :  { %p1902_p10 = pnand %p1901_p9, %p1895_p6 }
  0x39   :  { %1905 = shalt.err (!%p1902_p10)
}
  0x3a   :  { %69 = dma.hbm_to_vmem [thread:$0]  %s2051_s4, 32, %s67_s15, [#allocation9]  }
  0x3b   :  { %1926 = dma.done.wait [#allocation3], 2304  }
  0x3c   :  { %1927 = vsyncadd [#allocation3], 4294964992 }
  0x3d   :  { %1928 = dma.done.wait [#allocation6], 69184  }
  0x3e   :  { %1929 = vsyncadd [#allocation6], 4294898112 }
  0x3f   :  { %1930 = dma.done.wait [#allocation9], 16416  }
  0x40   :  { %1931 = vsyncadd [#allocation9], 4294950880  ;;  %v164_v0 = vld [vmem:[#allocation5 + $0x1e8] sm:$0xff]  ;;  %v163_v2 = vld [vmem:[#allocation5 + $0x1e0] sm:$0xff]  ;;  %vm665_vm0 = vcmask 457728   ;;  %s1946_s2 = smov [#allocation11]  }
  0x41   :  { %v292_v1 = vld [vmem:[#allocation5 + $0x5e8] sm:$0xff]  ;;  %672 = vmatprep.subr.mxu0 %v164_v0  ;;  %v291_v3 = vld [vmem:[#allocation5 + $0x5e0] sm:$0xff]  ;;  %s1757_s4 = sshll.u32 %s1946_s2, 4  ;;  %s1758_s4 = int_to_ptr.vmem [resolvable:$true] %s1757_s4 }
  0x42   :  { %749 = vmatprep.subr.mxu1 %v292_v1  ;;  %v160_v4 = vld [vmem:[#allocation5 + $0x1c8] sm:$0xff]  ;;  %673 = vmatpush1.msra.mxu0 %v163_v2  ;;  %v159_v6 = vld [vmem:[#allocation5 + $0x1c0] sm:$0xff]  ;;  %s1906_s21 = scalar_lea.vmem %s1758_s4, 512  ;;  %p1911_p12 = scmp.lt.s32.totalorder %s1758_s4, %s1758_s4 }
  0x43   :  { %v288_v5 = vld [vmem:[#allocation5 + $0x5c8] sm:$0xff]  ;;  %750 = vmatpush1.msra.mxu1 %v291_v3  ;;  %v287_v7 = vld [vmem:[#allocation5 + $0x5c0] sm:$0xff]  ;;  %674 = vmatprep.subr.mxu0 %v160_v4  ;;  %p1907_p11 = scmp.ne.s32.totalorder %s1758_s4, %s1906_s21  ;;  %p1912_p13 = scmp.lt.s32.totalorder %s1906_s21, %s1906_s21 }
  0x44   :  { %v156_v8 = vld [vmem:[#allocation5 + $0x1a8] sm:$0xff]  ;;  %751 = vmatprep.subr.mxu1 %v288_v5  ;;  %v155_v10 = vld [vmem:[#allocation5 + $0x1a0] sm:$0xff]  ;;  %675 = vmatpush1.msra.mxu0 %v159_v6 }
  0x45   :  { %v284_v9 = vld [vmem:[#allocation5 + $0x5a8] sm:$0xff]  ;;  %v283_v11 = vld [vmem:[#allocation5 + $0x5a0] sm:$0xff]  ;;  %752 = vmatpush1.msra.mxu1 %v287_v7  ;;  %676 = vmatprep.subr.mxu0 %v156_v8  ;;  %p1913_p0 = por %p1912_p13, %p1911_p12 }
  0x46   :  { %v152_v12 = vld [vmem:[#allocation5 + $0x188] sm:$0xff]  ;;  %753 = vmatprep.subr.mxu1 %v284_v9  ;;  %v151_v14 = vld [vmem:[#allocation5 + $0x180] sm:$0xff]  ;;  %677 = vmatpush1.msra.mxu0 %v155_v10 }
  0x47   :  { %v280_v13 = vld [vmem:[#allocation5 + $0x588] sm:$0xff]  ;;  %v279_v15 = vld [vmem:[#allocation5 + $0x580] sm:$0xff]  ;;  %754 = vmatpush1.msra.mxu1 %v283_v11  ;;  %678 = vmatprep.subr.mxu0 %v152_v12  ;;  %p1914_p1 = pnand %p1913_p0, %p1907_p11 }
  0x48   :  { %v148_v16 = vld [vmem:[#allocation5 + $0x168] sm:$0xff]  ;;  %755 = vmatprep.subr.mxu1 %v280_v13  ;;  %v147_v18 = vld [vmem:[#allocation5 + $0x160] sm:$0xff]  ;;  %679 = vmatpush1.msra.mxu0 %v151_v14 }
  0x49   :  { %v276_v17 = vld [vmem:[#allocation5 + $0x568] sm:$0xff]  ;;  %v275_v19 = vld [vmem:[#allocation5 + $0x560] sm:$0xff]  ;;  %756 = vmatpush1.msra.mxu1 %v279_v15  ;;  %680 = vmatprep.subr.mxu0 %v148_v16 }
  0x4a   :  { %v144_v20 = vld [vmem:[#allocation5 + $0x148] sm:$0xff]  ;;  %757 = vmatprep.subr.mxu1 %v276_v17  ;;  %v143_v22 = vld [vmem:[#allocation5 + $0x140] sm:$0xff]  ;;  %681 = vmatpush1.msra.mxu0 %v147_v18 }
  0x4b   :  { %v272_v21 = vld [vmem:[#allocation5 + $0x548] sm:$0xff]  ;;  %v271_v23 = vld [vmem:[#allocation5 + $0x540] sm:$0xff]  ;;  %758 = vmatpush1.msra.mxu1 %v275_v19  ;;  %682 = vmatprep.subr.mxu0 %v144_v20 }
  0x4c   :  { %v140_v24 = vld [vmem:[#allocation5 + $0x128] sm:$0xff]  ;;  %759 = vmatprep.subr.mxu1 %v272_v21  ;;  %v139_v26 = vld [vmem:[#allocation5 + $0x120] sm:$0xff]  ;;  %683 = vmatpush1.msra.mxu0 %v143_v22 }
  0x4d   :  { %v268_v25 = vld [vmem:[#allocation5 + $0x528] sm:$0xff]  ;;  %v267_v27 = vld [vmem:[#allocation5 + $0x520] sm:$0xff]  ;;  %760 = vmatpush1.msra.mxu1 %v271_v23  ;;  %684 = vmatprep.subr.mxu0 %v140_v24 }
  0x4e   :  { %v136_v28 = vld [vmem:[#allocation5 + $0x108] sm:$0xff]  ;;  %761 = vmatprep.subr.mxu1 %v268_v25  ;;  %v135_v30 = vld [vmem:[#allocation5 + $0x100] sm:$0xff]  ;;  %685 = vmatpush1.msra.mxu0 %v139_v26 }
  0x4f   :  { %v264_v29 = vld [vmem:[#allocation5 + $0x508] sm:$0xff]  ;;  %v263_v31 = vld [vmem:[#allocation5 + $0x500] sm:$0xff]  ;;  %762 = vmatpush1.msra.mxu1 %v267_v27  ;;  %686 = vmatprep.subr.mxu0 %v136_v28 }
  0x50   :  { %v132_v32 = vld [vmem:[#allocation5 + $0xe8] sm:$0xff]  ;;  %763 = vmatprep.subr.mxu1 %v264_v29  ;;  %v131_v34 = vld [vmem:[#allocation5 + $0xe0] sm:$0xff]  ;;  %687 = vmatpush1.msra.mxu0 %v135_v30 }
  0x51   :  { %v260_v33 = vld [vmem:[#allocation5 + $0x4e8] sm:$0xff]  ;;  %v259_v35 = vld [vmem:[#allocation5 + $0x4e0] sm:$0xff]  ;;  %764 = vmatpush1.msra.mxu1 %v263_v31  ;;  %688 = vmatprep.subr.mxu0 %v132_v32 }
  0x52   :  { %v128_v36 = vld [vmem:[#allocation5 + $0xc8] sm:$0xff]  ;;  %765 = vmatprep.subr.mxu1 %v260_v33  ;;  %v127_v38 = vld [vmem:[#allocation5 + $0xc0] sm:$0xff]  ;;  %689 = vmatpush1.msra.mxu0 %v131_v34 }
  0x53   :  { %v256_v37 = vld [vmem:[#allocation5 + $0x4c8] sm:$0xff]  ;;  %v255_v39 = vld [vmem:[#allocation5 + $0x4c0] sm:$0xff]  ;;  %766 = vmatpush1.msra.mxu1 %v259_v35  ;;  %690 = vmatprep.subr.mxu0 %v128_v36 }
  0x54   :  { %v124_v40 = vld [vmem:[#allocation5 + $0xa8] sm:$0xff]  ;;  %767 = vmatprep.subr.mxu1 %v256_v37  ;;  %v123_v42 = vld [vmem:[#allocation5 + $0xa0] sm:$0xff]  ;;  %691 = vmatpush1.msra.mxu0 %v127_v38 }
  0x55   :  { %v252_v41 = vld [vmem:[#allocation5 + $0x4a8] sm:$0xff]  ;;  %v251_v43 = vld [vmem:[#allocation5 + $0x4a0] sm:$0xff]  ;;  %768 = vmatpush1.msra.mxu1 %v255_v39  ;;  %692 = vmatprep.subr.mxu0 %v124_v40 }
  0x56   :  { %v120_v44 = vld [vmem:[#allocation5 + $0x88] sm:$0xff]  ;;  %769 = vmatprep.subr.mxu1 %v252_v41  ;;  %v119_v46 = vld [vmem:[#allocation5 + $0x80] sm:$0xff]  ;;  %693 = vmatpush1.msra.mxu0 %v123_v42 }
  0x57   :  { %v248_v45 = vld [vmem:[#allocation5 + $0x488] sm:$0xff]  ;;  %v247_v47 = vld [vmem:[#allocation5 + $0x480] sm:$0xff]  ;;  %770 = vmatpush1.msra.mxu1 %v251_v43  ;;  %694 = vmatprep.subr.mxu0 %v120_v44 }
  0x58   :  { %v116_v48 = vld [vmem:[#allocation5 + $0x68] sm:$0xff]  ;;  %771 = vmatprep.subr.mxu1 %v248_v45  ;;  %v115_v50 = vld [vmem:[#allocation5 + $0x60] sm:$0xff]  ;;  %695 = vmatpush1.msra.mxu0 %v119_v46 }
  0x59   :  { %v244_v49 = vld [vmem:[#allocation5 + $0x468] sm:$0xff]  ;;  %v243_v51 = vld [vmem:[#allocation5 + $0x460] sm:$0xff]  ;;  %772 = vmatpush1.msra.mxu1 %v247_v47  ;;  %696 = vmatprep.subr.mxu0 %v116_v48 }
  0x5a   :  { %v112_v52 = vld [vmem:[#allocation5 + $0x48] sm:$0xff]  ;;  %773 = vmatprep.subr.mxu1 %v244_v49  ;;  %v111_v54 = vld [vmem:[#allocation5 + $0x40] sm:$0xff]  ;;  %697 = vmatpush1.msra.mxu0 %v115_v50 }
  0x5b   :  { %v240_v53 = vld [vmem:[#allocation5 + $0x448] sm:$0xff]  ;;  %v239_v55 = vld [vmem:[#allocation5 + $0x440] sm:$0xff]  ;;  %774 = vmatpush1.msra.mxu1 %v243_v51  ;;  %698 = vmatprep.subr.mxu0 %v112_v52 }
  0x5c   :  { %v108_v56 = vld [vmem:[#allocation5 + $0x28] sm:$0xff]  ;;  %775 = vmatprep.subr.mxu1 %v240_v53  ;;  %v107_v58 = vld [vmem:[#allocation5 + $0x20] sm:$0xff]  ;;  %699 = vmatpush1.msra.mxu0 %v111_v54 }
  0x5d   :  { %v236_v57 = vld [vmem:[#allocation5 + $0x428] sm:$0xff]  ;;  %v235_v59 = vld [vmem:[#allocation5 + $0x420] sm:$0xff]  ;;  %776 = vmatpush1.msra.mxu1 %v239_v55  ;;  %700 = vmatprep.subr.mxu0 %v108_v56 }
  0x5e   :  { %v104_v60 = vld [vmem:[#allocation5 + $0x8] sm:$0xff]  ;;  %777 = vmatprep.subr.mxu1 %v236_v57  ;;  %v103_v62 = vld [vmem:[#allocation5] sm:$0xff]  ;;  %701 = vmatpush1.msra.mxu0 %v107_v58 }
  0x5f   :  { %v232_v61 = vld [vmem:[#allocation5 + $0x408] sm:$0xff]  ;;  %v231_v63 = vld [vmem:[#allocation5 + $0x400] sm:$0xff]  ;;  %778 = vmatpush1.msra.mxu1 %v235_v59  ;;  %702 = vmatprep.subr.mxu0 %v104_v60 }
  0x60   :  { %v228_v0 = vld [vmem:[#allocation5 + $0x3e8] sm:$0xff]  ;;  %779 = vmatprep.subr.mxu1 %v232_v61  ;;  %v227_v2 = vld [vmem:[#allocation5 + $0x3e0] sm:$0xff]  ;;  %703 = vmatpush1.msra.mxu0 %v103_v62 }
  0x61   :  { %v356_v1 = vld [vmem:[#allocation5 + $0x7e8] sm:$0xff]  ;;  %v355_v3 = vld [vmem:[#allocation5 + $0x7e0] sm:$0xff]  ;;  %780 = vmatpush1.msra.mxu1 %v231_v63  ;;  %704 = vmatprep.subr.mxu0 %v228_v0  ;;  %v86_v63 = vld [vmem:[#allocation2 + $0x8] sm:$0xff] }
  0x62   :  { %v224_v4 = vld [vmem:[#allocation5 + $0x3c8] sm:$0xff]  ;;  %781 = vmatprep.subr.mxu1 %v356_v1  ;;  %v223_v6 = vld [vmem:[#allocation5 + $0x3c0] sm:$0xff]  ;;  %705 = vmatpush2.msra.mxu0 %v227_v2  ;;  %v85_v1 = vld [vmem:[#allocation2] sm:$0xff] }
  0x63   :  { %v352_v5 = vld [vmem:[#allocation5 + $0x7c8] sm:$0xff]  ;;  %v351_v7 = vld [vmem:[#allocation5 + $0x7c0] sm:$0xff]  ;;  %782 = vmatpush2.msra.mxu1 %v355_v3  ;;  %706 = vmatprep.subr.mxu0 %v224_v4 }
  0x64   :  { %v220_v8 = vld [vmem:[#allocation5 + $0x3a8] sm:$0xff]  ;;  %783 = vmatprep.subr.mxu1 %v352_v5  ;;  %v219_v10 = vld [vmem:[#allocation5 + $0x3a0] sm:$0xff]  ;;  %707 = vmatpush2.msra.mxu0 %v223_v6 }
  0x65   :  { %v348_v9 = vld [vmem:[#allocation5 + $0x7a8] sm:$0xff]  ;;  %v347_v11 = vld [vmem:[#allocation5 + $0x7a0] sm:$0xff]  ;;  %784 = vmatpush2.msra.mxu1 %v351_v7  ;;  %708 = vmatprep.subr.mxu0 %v220_v8 }
  0x66   :  { %v216_v12 = vld [vmem:[#allocation5 + $0x388] sm:$0xff]  ;;  %785 = vmatprep.subr.mxu1 %v348_v9  ;;  %v215_v14 = vld [vmem:[#allocation5 + $0x380] sm:$0xff]  ;;  %709 = vmatpush2.msra.mxu0 %v219_v10 }
  0x67   :  { %v344_v13 = vld [vmem:[#allocation5 + $0x788] sm:$0xff]  ;;  %v343_v15 = vld [vmem:[#allocation5 + $0x780] sm:$0xff]  ;;  %786 = vmatpush2.msra.mxu1 %v347_v11  ;;  %710 = vmatprep.subr.mxu0 %v216_v12 }
  0x68   :  { %v212_v16 = vld [vmem:[#allocation5 + $0x368] sm:$0xff]  ;;  %787 = vmatprep.subr.mxu1 %v344_v13  ;;  %v211_v18 = vld [vmem:[#allocation5 + $0x360] sm:$0xff]  ;;  %711 = vmatpush2.msra.mxu0 %v215_v14 }
  0x69   :  { %v340_v17 = vld [vmem:[#allocation5 + $0x768] sm:$0xff]  ;;  %v339_v19 = vld [vmem:[#allocation5 + $0x760] sm:$0xff]  ;;  %788 = vmatpush2.msra.mxu1 %v343_v15  ;;  %712 = vmatprep.subr.mxu0 %v212_v16 }
  0x6a   :  { %v208_v20 = vld [vmem:[#allocation5 + $0x348] sm:$0xff]  ;;  %789 = vmatprep.subr.mxu1 %v340_v17  ;;  %v207_v22 = vld [vmem:[#allocation5 + $0x340] sm:$0xff]  ;;  %713 = vmatpush2.msra.mxu0 %v211_v18 }
  0x6b   :  { %v336_v21 = vld [vmem:[#allocation5 + $0x748] sm:$0xff]  ;;  %v335_v23 = vld [vmem:[#allocation5 + $0x740] sm:$0xff]  ;;  %790 = vmatpush2.msra.mxu1 %v339_v19  ;;  %714 = vmatprep.subr.mxu0 %v208_v20 }
  0x6c   :  { %v204_v24 = vld [vmem:[#allocation5 + $0x328] sm:$0xff]  ;;  %791 = vmatprep.subr.mxu1 %v336_v21  ;;  %v203_v26 = vld [vmem:[#allocation5 + $0x320] sm:$0xff]  ;;  %715 = vmatpush2.msra.mxu0 %v207_v22 }
  0x6d   :  { %v332_v25 = vld [vmem:[#allocation5 + $0x728] sm:$0xff]  ;;  %v331_v27 = vld [vmem:[#allocation5 + $0x720] sm:$0xff]  ;;  %792 = vmatpush2.msra.mxu1 %v335_v23  ;;  %716 = vmatprep.subr.mxu0 %v204_v24 }
  0x6e   :  { %v200_v28 = vld [vmem:[#allocation5 + $0x308] sm:$0xff]  ;;  %793 = vmatprep.subr.mxu1 %v332_v25  ;;  %v199_v30 = vld [vmem:[#allocation5 + $0x300] sm:$0xff]  ;;  %717 = vmatpush2.msra.mxu0 %v203_v26 }
  0x6f   :  { %v328_v29 = vld [vmem:[#allocation5 + $0x708] sm:$0xff]  ;;  %v327_v31 = vld [vmem:[#allocation5 + $0x700] sm:$0xff]  ;;  %794 = vmatpush2.msra.mxu1 %v331_v27  ;;  %718 = vmatprep.subr.mxu0 %v200_v28 }
  0x70   :  { %v196_v32 = vld [vmem:[#allocation5 + $0x2e8] sm:$0xff]  ;;  %795 = vmatprep.subr.mxu1 %v328_v29  ;;  %v195_v34 = vld [vmem:[#allocation5 + $0x2e0] sm:$0xff]  ;;  %719 = vmatpush2.msra.mxu0 %v199_v30 }
  0x71   :  { %v324_v33 = vld [vmem:[#allocation5 + $0x6e8] sm:$0xff]  ;;  %v323_v35 = vld [vmem:[#allocation5 + $0x6e0] sm:$0xff]  ;;  %796 = vmatpush2.msra.mxu1 %v327_v31  ;;  %720 = vmatprep.subr.mxu0 %v196_v32 }
  0x72   :  { %v192_v36 = vld [vmem:[#allocation5 + $0x2c8] sm:$0xff]  ;;  %797 = vmatprep.subr.mxu1 %v324_v33  ;;  %v191_v38 = vld [vmem:[#allocation5 + $0x2c0] sm:$0xff]  ;;  %721 = vmatpush2.msra.mxu0 %v195_v34 }
  0x73   :  { %v320_v37 = vld [vmem:[#allocation5 + $0x6c8] sm:$0xff]  ;;  %v319_v39 = vld [vmem:[#allocation5 + $0x6c0] sm:$0xff]  ;;  %798 = vmatpush2.msra.mxu1 %v323_v35  ;;  %722 = vmatprep.subr.mxu0 %v192_v36 }
  0x74   :  { %v188_v40 = vld [vmem:[#allocation5 + $0x2a8] sm:$0xff]  ;;  %799 = vmatprep.subr.mxu1 %v320_v37  ;;  %v187_v42 = vld [vmem:[#allocation5 + $0x2a0] sm:$0xff]  ;;  %723 = vmatpush2.msra.mxu0 %v191_v38 }
  0x75   :  { %v316_v41 = vld [vmem:[#allocation5 + $0x6a8] sm:$0xff]  ;;  %v315_v43 = vld [vmem:[#allocation5 + $0x6a0] sm:$0xff]  ;;  %800 = vmatpush2.msra.mxu1 %v319_v39  ;;  %724 = vmatprep.subr.mxu0 %v188_v40 }
  0x76   :  { %v184_v44 = vld [vmem:[#allocation5 + $0x288] sm:$0xff]  ;;  %801 = vmatprep.subr.mxu1 %v316_v41  ;;  %v183_v46 = vld [vmem:[#allocation5 + $0x280] sm:$0xff]  ;;  %725 = vmatpush2.msra.mxu0 %v187_v42 }
  0x77   :  { %v312_v45 = vld [vmem:[#allocation5 + $0x688] sm:$0xff]  ;;  %v311_v47 = vld [vmem:[#allocation5 + $0x680] sm:$0xff]  ;;  %802 = vmatpush2.msra.mxu1 %v315_v43  ;;  %726 = vmatprep.subr.mxu0 %v184_v44 }
  0x78   :  { %v180_v48 = vld [vmem:[#allocation5 + $0x268] sm:$0xff]  ;;  %803 = vmatprep.subr.mxu1 %v312_v45  ;;  %v179_v50 = vld [vmem:[#allocation5 + $0x260] sm:$0xff]  ;;  %727 = vmatpush2.msra.mxu0 %v183_v46 }
  0x79   :  { %v308_v49 = vld [vmem:[#allocation5 + $0x668] sm:$0xff]  ;;  %v307_v51 = vld [vmem:[#allocation5 + $0x660] sm:$0xff]  ;;  %804 = vmatpush2.msra.mxu1 %v311_v47  ;;  %728 = vmatprep.subr.mxu0 %v180_v48 }
  0x7a   :  { %v176_v52 = vld [vmem:[#allocation5 + $0x248] sm:$0xff]  ;;  %805 = vmatprep.subr.mxu1 %v308_v49  ;;  %v175_v54 = vld [vmem:[#allocation5 + $0x240] sm:$0xff]  ;;  %729 = vmatpush2.msra.mxu0 %v179_v50 }
  0x7b   :  { %v304_v53 = vld [vmem:[#allocation5 + $0x648] sm:$0xff]  ;;  %v303_v55 = vld [vmem:[#allocation5 + $0x640] sm:$0xff]  ;;  %806 = vmatpush2.msra.mxu1 %v307_v51  ;;  %730 = vmatprep.subr.mxu0 %v176_v52 }
  0x7c   :  { %v172_v56 = vld [vmem:[#allocation5 + $0x228] sm:$0xff]  ;;  %807 = vmatprep.subr.mxu1 %v304_v53  ;;  %v171_v58 = vld [vmem:[#allocation5 + $0x220] sm:$0xff]  ;;  %731 = vmatpush2.msra.mxu0 %v175_v54 }
  0x7d   :  { %v300_v57 = vld [vmem:[#allocation5 + $0x628] sm:$0xff]  ;;  %v299_v59 = vld [vmem:[#allocation5 + $0x620] sm:$0xff]  ;;  %808 = vmatpush2.msra.mxu1 %v303_v55  ;;  %732 = vmatprep.subr.mxu0 %v172_v56 }
  0x7e   :  { %v168_v60 = vld [vmem:[#allocation5 + $0x208] sm:$0xff]  ;;  %809 = vmatprep.subr.mxu1 %v300_v57  ;;  %v167_v62 = vld [vmem:[#allocation5 + $0x200] sm:$0xff]  ;;  %733 = vmatpush2.msra.mxu0 %v171_v58 }
  0x7f   :  { %v296_v61 = vld [vmem:[#allocation5 + $0x608] sm:$0xff]  ;;  %810 = vmatpush2.msra.mxu1 %v299_v59  ;;  %v295_v0 = vld [vmem:[#allocation5 + $0x600] sm:$0xff]  ;;  %734 = vmatprep.subr.mxu0 %v168_v60 }
  0x80   :  { %811 = vmatprep.subr.mxu1 %v296_v61  ;;  %v88_v2 = vld [vmem:[#allocation2 + $0x18] sm:$0xff]  ;;  %735 = vmatpush2.msra.mxu0 %v167_v62  ;;  %v87_v5 = vld [vmem:[#allocation2 + $0x10] sm:$0xff] }
  0x81   :  { %v420_v3 = vld [vmem:[#allocation5 + $0x9e8] sm:$0xff]  ;;  %736 = vmatprep.mubr.f32.mxu0 %v86_v63  ;;  %812 = vmatpush2.msra.mxu1 %v295_v0  ;;  %v419_v6 = vld [vmem:[#allocation5 + $0x9e0] sm:$0xff] }
  0x82   :  { %v548_v4 = vld [vmem:[#allocation5 + $0xde8] sm:$0xff]  ;;  %737 = vmatmul.mubr.f32.vlgmr.msra.gmra.mxu0 %v85_v1  ;;  %v547_v7 = vld [vmem:[#allocation5 + $0xde0] sm:$0xff]  ;;  %813 = vmatprep.mubr.f32.mxu1 %v88_v2 }
  0x83   :  { %826 = vmatprep.subr.mxu0 %v420_v3  ;;  %v416_v8 = vld [vmem:[#allocation5 + $0x9c8] sm:$0xff]  ;;  %903 = vmatprep.subr.mxu1 %v548_v4  ;;  %v415_v10 = vld [vmem:[#allocation5 + $0x9c0] sm:$0xff] }
  0x84   :  { %v544_v9 = vld [vmem:[#allocation5 + $0xdc8] sm:$0xff]  ;;  %814 = vmatmul.mubr.f32.vlgmr.msra.gmra.mxu1 %v87_v5  ;;  %v543_v11 = vld [vmem:[#allocation5 + $0xdc0] sm:$0xff]  ;;  %827 = vmatpush1.msra.mxu0 %v419_v6 }
  0x85   :  { %904 = vmatpush1.msra.mxu1 %v547_v7  ;;  %v412_v12 = vld [vmem:[#allocation5 + $0x9a8] sm:$0xff]  ;;  %828 = vmatprep.subr.mxu0 %v416_v8  ;;  %v411_v14 = vld [vmem:[#allocation5 + $0x9a0] sm:$0xff] }
  0x86   :  { %v540_v13 = vld [vmem:[#allocation5 + $0xda8] sm:$0xff]  ;;  %905 = vmatprep.subr.mxu1 %v544_v9  ;;  %v539_v15 = vld [vmem:[#allocation5 + $0xda0] sm:$0xff]  ;;  %829 = vmatpush1.msra.mxu0 %v415_v10 }
  0x87   :  { %906 = vmatpush1.msra.mxu1 %v543_v11  ;;  %v408_v16 = vld [vmem:[#allocation5 + $0x988] sm:$0xff]  ;;  %830 = vmatprep.subr.mxu0 %v412_v12  ;;  %v407_v18 = vld [vmem:[#allocation5 + $0x980] sm:$0xff] }
  0x88   :  { %v536_v17 = vld [vmem:[#allocation5 + $0xd88] sm:$0xff]  ;;  %907 = vmatprep.subr.mxu1 %v540_v13  ;;  %v535_v19 = vld [vmem:[#allocation5 + $0xd80] sm:$0xff]  ;;  %831 = vmatpush1.msra.mxu0 %v411_v14 }
  0x89   :  { %908 = vmatpush1.msra.mxu1 %v539_v15  ;;  %v404_v20 = vld [vmem:[#allocation5 + $0x968] sm:$0xff]  ;;  %832 = vmatprep.subr.mxu0 %v408_v16  ;;  %v403_v22 = vld [vmem:[#allocation5 + $0x960] sm:$0xff] }
  0x8a   :  { %v532_v21 = vld [vmem:[#allocation5 + $0xd68] sm:$0xff]  ;;  %909 = vmatprep.subr.mxu1 %v536_v17  ;;  %v531_v23 = vld [vmem:[#allocation5 + $0xd60] sm:$0xff]  ;;  %833 = vmatpush1.msra.mxu0 %v407_v18 }
  0x8b   :  { %910 = vmatpush1.msra.mxu1 %v535_v19  ;;  %v400_v24 = vld [vmem:[#allocation5 + $0x948] sm:$0xff]  ;;  %834 = vmatprep.subr.mxu0 %v404_v20  ;;  %v399_v26 = vld [vmem:[#allocation5 + $0x940] sm:$0xff] }
  0x8c   :  { %v528_v25 = vld [vmem:[#allocation5 + $0xd48] sm:$0xff]  ;;  %911 = vmatprep.subr.mxu1 %v532_v21  ;;  %v527_v27 = vld [vmem:[#allocation5 + $0xd40] sm:$0xff]  ;;  %835 = vmatpush1.msra.mxu0 %v403_v22 }
  0x8d   :  { %912 = vmatpush1.msra.mxu1 %v531_v23  ;;  %v396_v28 = vld [vmem:[#allocation5 + $0x928] sm:$0xff]  ;;  %836 = vmatprep.subr.mxu0 %v400_v24  ;;  %v395_v30 = vld [vmem:[#allocation5 + $0x920] sm:$0xff] }
  0x8e   :  { %v524_v29 = vld [vmem:[#allocation5 + $0xd28] sm:$0xff]  ;;  %913 = vmatprep.subr.mxu1 %v528_v25  ;;  %v523_v31 = vld [vmem:[#allocation5 + $0xd20] sm:$0xff]  ;;  %837 = vmatpush1.msra.mxu0 %v399_v26 }
  0x8f   :  { %914 = vmatpush1.msra.mxu1 %v527_v27  ;;  %v392_v32 = vld [vmem:[#allocation5 + $0x908] sm:$0xff]  ;;  %838 = vmatprep.subr.mxu0 %v396_v28  ;;  %v391_v34 = vld [vmem:[#allocation5 + $0x900] sm:$0xff] }
  0x90   :  { %v520_v33 = vld [vmem:[#allocation5 + $0xd08] sm:$0xff]  ;;  %915 = vmatprep.subr.mxu1 %v524_v29  ;;  %v519_v35 = vld [vmem:[#allocation5 + $0xd00] sm:$0xff]  ;;  %839 = vmatpush1.msra.mxu0 %v395_v30 }
  0x91   :  { %916 = vmatpush1.msra.mxu1 %v523_v31  ;;  %v388_v36 = vld [vmem:[#allocation5 + $0x8e8] sm:$0xff]  ;;  %840 = vmatprep.subr.mxu0 %v392_v32  ;;  %v387_v38 = vld [vmem:[#allocation5 + $0x8e0] sm:$0xff] }
  0x92   :  { %v516_v37 = vld [vmem:[#allocation5 + $0xce8] sm:$0xff]  ;;  %917 = vmatprep.subr.mxu1 %v520_v33  ;;  %v515_v39 = vld [vmem:[#allocation5 + $0xce0] sm:$0xff]  ;;  %841 = vmatpush1.msra.mxu0 %v391_v34 }
  0x93   :  { %918 = vmatpush1.msra.mxu1 %v519_v35  ;;  %v384_v40 = vld [vmem:[#allocation5 + $0x8c8] sm:$0xff]  ;;  %842 = vmatprep.subr.mxu0 %v388_v36  ;;  %v383_v42 = vld [vmem:[#allocation5 + $0x8c0] sm:$0xff] }
  0x94   :  { %v512_v41 = vld [vmem:[#allocation5 + $0xcc8] sm:$0xff]  ;;  %919 = vmatprep.subr.mxu1 %v516_v37  ;;  %v511_v43 = vld [vmem:[#allocation5 + $0xcc0] sm:$0xff]  ;;  %843 = vmatpush1.msra.mxu0 %v387_v38 }
  0x95   :  { %920 = vmatpush1.msra.mxu1 %v515_v39  ;;  %v380_v44 = vld [vmem:[#allocation5 + $0x8a8] sm:$0xff]  ;;  %844 = vmatprep.subr.mxu0 %v384_v40  ;;  %v379_v46 = vld [vmem:[#allocation5 + $0x8a0] sm:$0xff] }
  0x96   :  { %v508_v45 = vld [vmem:[#allocation5 + $0xca8] sm:$0xff]  ;;  %921 = vmatprep.subr.mxu1 %v512_v41  ;;  %v507_v47 = vld [vmem:[#allocation5 + $0xca0] sm:$0xff]  ;;  %845 = vmatpush1.msra.mxu0 %v383_v42 }
  0x97   :  { %922 = vmatpush1.msra.mxu1 %v511_v43  ;;  %v376_v48 = vld [vmem:[#allocation5 + $0x888] sm:$0xff]  ;;  %846 = vmatprep.subr.mxu0 %v380_v44  ;;  %v375_v50 = vld [vmem:[#allocation5 + $0x880] sm:$0xff] }
  0x98   :  { %v504_v49 = vld [vmem:[#allocation5 + $0xc88] sm:$0xff]  ;;  %923 = vmatprep.subr.mxu1 %v508_v45  ;;  %v503_v51 = vld [vmem:[#allocation5 + $0xc80] sm:$0xff]  ;;  %847 = vmatpush1.msra.mxu0 %v379_v46 }
  0x99   :  { %924 = vmatpush1.msra.mxu1 %v507_v47  ;;  %v372_v52 = vld [vmem:[#allocation5 + $0x868] sm:$0xff]  ;;  %848 = vmatprep.subr.mxu0 %v376_v48  ;;  %v371_v54 = vld [vmem:[#allocation5 + $0x860] sm:$0xff] }
  0x9a   :  { %v500_v53 = vld [vmem:[#allocation5 + $0xc68] sm:$0xff]  ;;  %925 = vmatprep.subr.mxu1 %v504_v49  ;;  %v499_v55 = vld [vmem:[#allocation5 + $0xc60] sm:$0xff]  ;;  %849 = vmatpush1.msra.mxu0 %v375_v50 }
  0x9b   :  { %926 = vmatpush1.msra.mxu1 %v503_v51  ;;  %v368_v56 = vld [vmem:[#allocation5 + $0x848] sm:$0xff]  ;;  %850 = vmatprep.subr.mxu0 %v372_v52  ;;  %v367_v58 = vld [vmem:[#allocation5 + $0x840] sm:$0xff] }
  0x9c   :  { %v496_v57 = vld [vmem:[#allocation5 + $0xc48] sm:$0xff]  ;;  %927 = vmatprep.subr.mxu1 %v500_v53  ;;  %v495_v59 = vld [vmem:[#allocation5 + $0xc40] sm:$0xff]  ;;  %851 = vmatpush1.msra.mxu0 %v371_v54 }
  0x9d   :  { %928 = vmatpush1.msra.mxu1 %v499_v55  ;;  %v364_v60 = vld [vmem:[#allocation5 + $0x828] sm:$0xff]  ;;  %852 = vmatprep.subr.mxu0 %v368_v56  ;;  %v363_v62 = vld [vmem:[#allocation5 + $0x820] sm:$0xff] }
  0x9e   :  { %v492_v61 = vld [vmem:[#allocation5 + $0xc28] sm:$0xff]  ;;  %929 = vmatprep.subr.mxu1 %v496_v57  ;;  %v491_v63 = vld [vmem:[#allocation5 + $0xc20] sm:$0xff]  ;;  %853 = vmatpush1.msra.mxu0 %v367_v58 }
  0x9f   :  { %930 = vmatpush1.msra.mxu1 %v495_v59  ;;  %v360_v0 = vld [vmem:[#allocation5 + $0x808] sm:$0xff]  ;;  %854 = vmatprep.subr.mxu0 %v364_v60  ;;  %v359_v2 = vld [vmem:[#allocation5 + $0x800] sm:$0xff]  ;;  %v94_v59 = vld [vmem:[#allocation2 + $0x48] sm:$0xff] }
  0xa0   :  { %v488_v1 = vld [vmem:[#allocation5 + $0xc08] sm:$0xff]  ;;  %931 = vmatprep.subr.mxu1 %v492_v61  ;;  %v487_v3 = vld [vmem:[#allocation5 + $0xc00] sm:$0xff]  ;;  %855 = vmatpush1.msra.mxu0 %v363_v62  ;;  %v97_v62 = vld [vmem:[#allocation2 + $0x60] sm:$0xff] }
  0xa1   :  { %932 = vmatpush1.msra.mxu1 %v491_v63  ;;  %v484_v4 = vld [vmem:[#allocation5 + $0xbe8] sm:$0xff]  ;;  %856 = vmatprep.subr.mxu0 %v360_v0  ;;  %v483_v6 = vld [vmem:[#allocation5 + $0xbe0] sm:$0xff] }
  0xa2   :  { %v612_v5 = vld [vmem:[#allocation5 + $0xfe8] sm:$0xff]  ;;  %933 = vmatprep.subr.mxu1 %v488_v1  ;;  %v611_v7 = vld [vmem:[#allocation5 + $0xfe0] sm:$0xff]  ;;  %857 = vmatpush1.msra.mxu0 %v359_v2 }
  0xa3   :  { %934 = vmatpush1.msra.mxu1 %v487_v3  ;;  %v480_v8 = vld [vmem:[#allocation5 + $0xbc8] sm:$0xff]  ;;  %858 = vmatprep.subr.mxu0 %v484_v4  ;;  %v479_v10 = vld [vmem:[#allocation5 + $0xbc0] sm:$0xff] }
  0xa4   :  { %v608_v9 = vld [vmem:[#allocation5 + $0xfc8] sm:$0xff]  ;;  %935 = vmatprep.subr.mxu1 %v612_v5  ;;  %v607_v11 = vld [vmem:[#allocation5 + $0xfc0] sm:$0xff]  ;;  %859 = vmatpush2.msra.mxu0 %v483_v6 }
  0xa5   :  { %936 = vmatpush2.msra.mxu1 %v611_v7  ;;  %v476_v12 = vld [vmem:[#allocation5 + $0xba8] sm:$0xff]  ;;  %860 = vmatprep.subr.mxu0 %v480_v8  ;;  %v475_v14 = vld [vmem:[#allocation5 + $0xba0] sm:$0xff]  ;;  %v90_v7 = vld [vmem:[#allocation2 + $0x28] sm:$0xff] }
  0xa6   :  { %v604_v13 = vld [vmem:[#allocation5 + $0xfa8] sm:$0xff]  ;;  %937 = vmatprep.subr.mxu1 %v608_v9  ;;  %v603_v15 = vld [vmem:[#allocation5 + $0xfa0] sm:$0xff]  ;;  %861 = vmatpush2.msra.mxu0 %v479_v10  ;;  %v89_v9 = vld [vmem:[#allocation2 + $0x20] sm:$0xff] }
  0xa7   :  { %938 = vmatpush2.msra.mxu1 %v607_v11  ;;  %v472_v16 = vld [vmem:[#allocation5 + $0xb88] sm:$0xff]  ;;  %862 = vmatprep.subr.mxu0 %v476_v12  ;;  %v471_v18 = vld [vmem:[#allocation5 + $0xb80] sm:$0xff]  ;;  %v166_v12 = vld [vmem:[#allocation5 + $0x1f8] sm:$0xff] }
  0xa8   :  { %v600_v17 = vld [vmem:[#allocation5 + $0xf88] sm:$0xff]  ;;  %939 = vmatprep.subr.mxu1 %v604_v13  ;;  %v599_v19 = vld [vmem:[#allocation5 + $0xf80] sm:$0xff]  ;;  %863 = vmatpush2.msra.mxu0 %v475_v14 }
  0xa9   :  { %940 = vmatpush2.msra.mxu1 %v603_v15  ;;  %v468_v20 = vld [vmem:[#allocation5 + $0xb68] sm:$0xff]  ;;  %864 = vmatprep.subr.mxu0 %v472_v16  ;;  %v467_v22 = vld [vmem:[#allocation5 + $0xb60] sm:$0xff]  ;;  %v165_v15 = vld [vmem:[#allocation5 + $0x1f0] sm:$0xff] }
  0xaa   :  { %v596_v21 = vld [vmem:[#allocation5 + $0xf68] sm:$0xff]  ;;  %941 = vmatprep.subr.mxu1 %v600_v17  ;;  %v595_v23 = vld [vmem:[#allocation5 + $0xf60] sm:$0xff]  ;;  %865 = vmatpush2.msra.mxu0 %v471_v18  ;;  %v162_v17 = vld [vmem:[#allocation5 + $0x1d8] sm:$0xff] }
  0xab   :  { %942 = vmatpush2.msra.mxu1 %v599_v19  ;;  %v464_v24 = vld [vmem:[#allocation5 + $0xb48] sm:$0xff]  ;;  %866 = vmatprep.subr.mxu0 %v468_v20  ;;  %v463_v26 = vld [vmem:[#allocation5 + $0xb40] sm:$0xff]  ;;  %v161_v20 = vld [vmem:[#allocation5 + $0x1d0] sm:$0xff] }
  0xac   :  { %v592_v25 = vld [vmem:[#allocation5 + $0xf48] sm:$0xff]  ;;  %943 = vmatprep.subr.mxu1 %v596_v21  ;;  %v591_v27 = vld [vmem:[#allocation5 + $0xf40] sm:$0xff]  ;;  %867 = vmatpush2.msra.mxu0 %v467_v22  ;;  %v98_v21 = vld [vmem:[#allocation2 + $0x68] sm:$0xff] }
  0xad   :  { %944 = vmatpush2.msra.mxu1 %v595_v23  ;;  %v460_v28 = vld [vmem:[#allocation5 + $0xb28] sm:$0xff]  ;;  %868 = vmatprep.subr.mxu0 %v464_v24  ;;  %v459_v30 = vld [vmem:[#allocation5 + $0xb20] sm:$0xff]  ;;  %v158_v23 = vld [vmem:[#allocation5 + $0x1b8] sm:$0xff] }
  0xae   :  { %v588_v29 = vld [vmem:[#allocation5 + $0xf28] sm:$0xff]  ;;  %945 = vmatprep.subr.mxu1 %v592_v25  ;;  %v587_v31 = vld [vmem:[#allocation5 + $0xf20] sm:$0xff]  ;;  %869 = vmatpush2.msra.mxu0 %v463_v26  ;;  %v101_v24 = vld [vmem:[#allocation2 + $0x80] sm:$0xff] }
  0xaf   :  { %946 = vmatpush2.msra.mxu1 %v591_v27  ;;  %v456_v32 = vld [vmem:[#allocation5 + $0xb08] sm:$0xff]  ;;  %870 = vmatprep.subr.mxu0 %v460_v28  ;;  %v455_v34 = vld [vmem:[#allocation5 + $0xb00] sm:$0xff]  ;;  %v157_v26 = vld [vmem:[#allocation5 + $0x1b0] sm:$0xff] }
  0xb0   :  { %v584_v33 = vld [vmem:[#allocation5 + $0xf08] sm:$0xff]  ;;  %947 = vmatprep.subr.mxu1 %v588_v29  ;;  %v583_v35 = vld [vmem:[#allocation5 + $0xf00] sm:$0xff]  ;;  %871 = vmatpush2.msra.mxu0 %v459_v30  ;;  %v154_v29 = vld [vmem:[#allocation5 + $0x198] sm:$0xff] }
  0xb1   :  { %948 = vmatpush2.msra.mxu1 %v587_v31  ;;  %v452_v36 = vld [vmem:[#allocation5 + $0xae8] sm:$0xff]  ;;  %872 = vmatprep.subr.mxu0 %v456_v32  ;;  %v451_v38 = vld [vmem:[#allocation5 + $0xae0] sm:$0xff]  ;;  %v153_v31 = vld [vmem:[#allocation5 + $0x190] sm:$0xff] }
  0xb2   :  { %v580_v37 = vld [vmem:[#allocation5 + $0xee8] sm:$0xff]  ;;  %949 = vmatprep.subr.mxu1 %v584_v33  ;;  %v579_v39 = vld [vmem:[#allocation5 + $0xee0] sm:$0xff]  ;;  %873 = vmatpush2.msra.mxu0 %v455_v34  ;;  %v150_v33 = vld [vmem:[#allocation5 + $0x178] sm:$0xff] }
  0xb3   :  { %950 = vmatpush2.msra.mxu1 %v583_v35  ;;  %v448_v40 = vld [vmem:[#allocation5 + $0xac8] sm:$0xff]  ;;  %874 = vmatprep.subr.mxu0 %v452_v36  ;;  %v447_v42 = vld [vmem:[#allocation5 + $0xac0] sm:$0xff]  ;;  %v149_v35 = vld [vmem:[#allocation5 + $0x170] sm:$0xff] }
  0xb4   :  { %v576_v41 = vld [vmem:[#allocation5 + $0xec8] sm:$0xff]  ;;  %951 = vmatprep.subr.mxu1 %v580_v37  ;;  %v575_v43 = vld [vmem:[#allocation5 + $0xec0] sm:$0xff]  ;;  %875 = vmatpush2.msra.mxu0 %v451_v38  ;;  %v146_v37 = vld [vmem:[#allocation5 + $0x158] sm:$0xff] }
  0xb5   :  { %952 = vmatpush2.msra.mxu1 %v579_v39  ;;  %v444_v44 = vld [vmem:[#allocation5 + $0xaa8] sm:$0xff]  ;;  %876 = vmatprep.subr.mxu0 %v448_v40  ;;  %v443_v46 = vld [vmem:[#allocation5 + $0xaa0] sm:$0xff]  ;;  %v145_v39 = vld [vmem:[#allocation5 + $0x150] sm:$0xff] }
  0xb6   :  { %v572_v45 = vld [vmem:[#allocation5 + $0xea8] sm:$0xff]  ;;  %953 = vmatprep.subr.mxu1 %v576_v41  ;;  %v571_v47 = vld [vmem:[#allocation5 + $0xea0] sm:$0xff]  ;;  %877 = vmatpush2.msra.mxu0 %v447_v42  ;;  %v142_v41 = vld [vmem:[#allocation5 + $0x138] sm:$0xff] }
  0xb7   :  { %954 = vmatpush2.msra.mxu1 %v575_v43  ;;  %v440_v48 = vld [vmem:[#allocation5 + $0xa88] sm:$0xff]  ;;  %878 = vmatprep.subr.mxu0 %v444_v44  ;;  %v439_v50 = vld [vmem:[#allocation5 + $0xa80] sm:$0xff]  ;;  %v141_v43 = vld [vmem:[#allocation5 + $0x130] sm:$0xff] }
  0xb8   :  { %v568_v49 = vld [vmem:[#allocation5 + $0xe88] sm:$0xff]  ;;  %955 = vmatprep.subr.mxu1 %v572_v45  ;;  %v567_v51 = vld [vmem:[#allocation5 + $0xe80] sm:$0xff]  ;;  %879 = vmatpush2.msra.mxu0 %v443_v46  ;;  %v93_v44 = vld [vmem:[#allocation2 + $0x40] sm:$0xff] }
  0xb9   :  { %956 = vmatpush2.msra.mxu1 %v571_v47  ;;  %v436_v52 = vld [vmem:[#allocation5 + $0xa68] sm:$0xff]  ;;  %880 = vmatprep.subr.mxu0 %v440_v48  ;;  %v435_v54 = vld [vmem:[#allocation5 + $0xa60] sm:$0xff]  ;;  %v138_v45 = vld [vmem:[#allocation5 + $0x118] sm:$0xff]  ;;  %v1945_v47 = vmov 0.0  }
  0xba   :  { %v564_v53 = vld [vmem:[#allocation5 + $0xe68] sm:$0xff]  ;;  %957 = vmatprep.subr.mxu1 %v568_v49  ;;  %v563_v55 = vld [vmem:[#allocation5 + $0xe60] sm:$0xff]  ;;  %881 = vmatpush2.msra.mxu0 %v439_v50  ;;  %v294_v46 = vld [vmem:[#allocation5 + $0x5f8] sm:$0xff] }
  0xbb   :  { %958 = vmatpush2.msra.mxu1 %v567_v51  ;;  %v95_v56 = vld [vmem:[#allocation2 + $0x50] sm:$0xff]  ;;  %v432_v57 = vld [vmem:[#allocation5 + $0xa48] sm:$0xff]  ;;  %882 = vmatprep.subr.mxu0 %v436_v52  ;;  %v137_v48 = vld [vmem:[#allocation5 + $0x110] sm:$0xff] }
  0xbc   :  { %959 = vmatprep.subr.mxu1 %v564_v53  ;;  %v560_v58 = vld [vmem:[#allocation5 + $0xe48] sm:$0xff]  ;;  %883 = vmatpush2.msra.mxu0 %v435_v54  ;;  %v431_v60 = vld [vmem:[#allocation5 + $0xa40] sm:$0xff]  ;;  %v293_v49 = vld [vmem:[#allocation5 + $0x5f0] sm:$0xff] }
  0xbd   :  { %960 = vmatpush2.msra.mxu1 %v563_v55  ;;  %v559_v61 = vld [vmem:[#allocation5 + $0xe40] sm:$0xff]  ;;  %742 = vmatprep.mubr.f32.mxu0 %v95_v56  ;;  %v428_v63 = vld [vmem:[#allocation5 + $0xa28] sm:$0xff]  ;;  %v134_v50 = vld [vmem:[#allocation5 + $0xf8] sm:$0xff] }
  0xbe   :  { %884 = vmatprep.subr.mxu0 %v432_v57  ;;  %961 = vmatprep.subr.mxu1 %v560_v58  ;;  %v556_v0 = vld [vmem:[#allocation5 + $0xe28] sm:$0xff]  ;;  %v427_v2 = vld [vmem:[#allocation5 + $0xa20] sm:$0xff]  ;;  %v290_v51 = vld [vmem:[#allocation5 + $0x5d8] sm:$0xff] }
  0xbf   :  { %743 = vmatmul.mubr.f32.gmra.mxu0 %v94_v59  ;;  %v96_v1 = vld [vmem:[#allocation2 + $0x58] sm:$0xff]  ;;  %962 = vmatpush2.msra.mxu1 %v559_v61  ;;  %v555_v3 = vld [vmem:[#allocation5 + $0xe20] sm:$0xff]  ;;  %v133_v52 = vld [vmem:[#allocation5 + $0xf0] sm:$0xff] }
  0xc0   :  { %885 = vmatpush2.msra.mxu0 %v431_v60  ;;  %819 = vmatprep.mubr.f32.mxu1 %v97_v62  ;;  %v424_v4 = vld [vmem:[#allocation5 + $0xa08] sm:$0xff]  ;;  %v423_v6 = vld [vmem:[#allocation5 + $0xa00] sm:$0xff]  ;;  %v289_v53 = vld [vmem:[#allocation5 + $0x5d0] sm:$0xff] }
  0xc1   :  { %886 = vmatprep.subr.mxu0 %v428_v63  ;;  %v552_v5 = vld [vmem:[#allocation5 + $0xe08] sm:$0xff]  ;;  %963 = vmatprep.subr.mxu1 %v556_v0  ;;  %v551_v8 = vld [vmem:[#allocation5 + $0xe00] sm:$0xff]  ;;  %v130_v54 = vld [vmem:[#allocation5 + $0xd8] sm:$0xff] }
  0xc2   :  { %820 = vmatmul.mubr.f32.gmra.mxu1 %v96_v1  ;;  %887 = vmatpush2.msra.mxu0 %v427_v2  ;;  %v92_v10 = vld [vmem:[#allocation2 + $0x38] sm:$0xff]  ;;  %v91_v13 = vld [vmem:[#allocation2 + $0x30] sm:$0xff]  ;;  %v102_v55 = vld [vmem:[#allocation2 + $0x88] sm:$0xff] }
  0xc3   :  { %964 = vmatpush2.msra.mxu1 %v555_v3  ;;  %888 = vmatprep.subr.mxu0 %v424_v4  ;;  %v640_v11 = vld [vmem:[#allocation5 + $0x10c8] sm:$0xff]  ;;  %v639_v14 = vld [vmem:[#allocation5 + $0x10c0] sm:$0xff]  ;;  %v286_v56 = vld [vmem:[#allocation5 + $0x5b8] sm:$0xff] }
  0xc4   :  { %965 = vmatprep.subr.mxu1 %v552_v5  ;;  %889 = vmatpush2.msra.mxu0 %v423_v6  ;;  %v636_v16 = vld [vmem:[#allocation5 + $0x10a8] sm:$0xff]  ;;  %v99_v18 = vld [vmem:[#allocation2 + $0x70] sm:$0xff]  ;;  %v129_v57 = vld [vmem:[#allocation5 + $0xd0] sm:$0xff] }
  0xc5   :  { %890 = vmatprep.mubr.f32.mxu0 %v90_v7  ;;  %966 = vmatpush2.msra.mxu1 %v551_v8  ;;  %v635_v19 = vld [vmem:[#allocation5 + $0x10a0] sm:$0xff]  ;;  %v632_v22 = vld [vmem:[#allocation5 + $0x1088] sm:$0xff]  ;;  %v285_v58 = vld [vmem:[#allocation5 + $0x5b0] sm:$0xff] }
  0xc6   :  { %891 = vmatmul.mubr.f32.vlgmr.msra.gmra.mxu0 %v89_v9  ;;  %967 = vmatprep.mubr.f32.mxu1 %v92_v10  ;;  %v631_v25 = vld [vmem:[#allocation5 + $0x1080] sm:$0xff]  ;;  %v628_v27 = vld [vmem:[#allocation5 + $0x1068] sm:$0xff]  ;;  %v126_v59 = vld [vmem:[#allocation5 + $0xb8] sm:$0xff] }
  0xc7   :  { %998 = vmatprep.subr.mxu0 %v640_v11  ;;  %1057 = vmatprep.subr.mxu1 %v166_v12  ;;  %v100_v28 = vld [vmem:[#allocation2 + $0x78] sm:$0xff]  ;;  %v627_v30 = vld [vmem:[#allocation5 + $0x1060] sm:$0xff]  ;;  %v282_v60 = vld [vmem:[#allocation5 + $0x598] sm:$0xff] }
  0xc8   :  { %968 = vmatmul.mubr.f32.vlgmr.msra.gmra.mxu1 %v91_v13  ;;  %999 = vmatpush1.msra.mxu0 %v639_v14  ;;  %v624_v32 = vld [vmem:[#allocation5 + $0x1048] sm:$0xff]  ;;  %v623_v34 = vld [vmem:[#allocation5 + $0x1040] sm:$0xff]  ;;  %v125_v61 = vld [vmem:[#allocation5 + $0xb0] sm:$0xff] }
  0xc9   :  { %1058 = vmatpush1.msra.mxu1 %v165_v15  ;;  %1000 = vmatprep.subr.mxu0 %v636_v16  ;;  %v620_v36 = vld [vmem:[#allocation5 + $0x1028] sm:$0xff]  ;;  %v619_v38 = vld [vmem:[#allocation5 + $0x1020] sm:$0xff]  ;;  %v281_v62 = vld [vmem:[#allocation5 + $0x590] sm:$0xff] }
  0xca   :  { %1059 = vmatprep.subr.mxu1 %v162_v17  ;;  %896 = vmatprep.mubr.f32.mxu0 %v99_v18  ;;  %v616_v40 = vld [vmem:[#allocation5 + $0x1008] sm:$0xff]  ;;  %v615_v42 = vld [vmem:[#allocation5 + $0x1000] sm:$0xff]  ;;  %v122_v63 = vld [vmem:[#allocation5 + $0x98] sm:$0xff] }
  0xcb   :  { %1001 = vmatpush1.msra.mxu0 %v635_v19  ;;  %1060 = vmatpush1.msra.mxu1 %v161_v20  ;;  %v278_v0 = vld [vmem:[#allocation5 + $0x578] sm:$0xff]  ;;  %v121_v1 = vld [vmem:[#allocation5 + $0x90] sm:$0xff] }
  0xcc   :  { %897 = vmatmul.mubr.f32.gmra.mxu0 %v98_v21  ;;  %1002 = vmatprep.subr.mxu0 %v632_v22  ;;  %v277_v2 = vld [vmem:[#allocation5 + $0x570] sm:$0xff]  ;;  %v118_v3 = vld [vmem:[#allocation5 + $0x78] sm:$0xff] }
  0xcd   :  { %1061 = vmatprep.subr.mxu1 %v158_v23  ;;  %973 = vmatprep.mubr.f32.mxu1 %v101_v24  ;;  %v274_v4 = vld [vmem:[#allocation5 + $0x558] sm:$0xff]  ;;  %v117_v5 = vld [vmem:[#allocation5 + $0x70] sm:$0xff] }
  0xce   :  { %1003 = vmatpush1.msra.mxu0 %v631_v25  ;;  %1062 = vmatpush1.msra.mxu1 %v157_v26  ;;  %v273_v6 = vld [vmem:[#allocation5 + $0x550] sm:$0xff]  ;;  %v114_v7 = vld [vmem:[#allocation5 + $0x58] sm:$0xff] }
  0xcf   :  { %1004 = vmatprep.subr.mxu0 %v628_v27  ;;  %974 = vmatmul.mubr.f32.gmra.mxu1 %v100_v28  ;;  %v270_v8 = vld [vmem:[#allocation5 + $0x538] sm:$0xff]  ;;  %v113_v9 = vld [vmem:[#allocation5 + $0x50] sm:$0xff] }
  0xd0   :  { %1063 = vmatprep.subr.mxu1 %v154_v29  ;;  %1005 = vmatpush1.msra.mxu0 %v627_v30  ;;  %v269_v10 = vld [vmem:[#allocation5 + $0x530] sm:$0xff]  ;;  %v110_v11 = vld [vmem:[#allocation5 + $0x38] sm:$0xff] }
  0xd1   :  { %1064 = vmatpush1.msra.mxu1 %v153_v31  ;;  %1006 = vmatprep.subr.mxu0 %v624_v32  ;;  %v266_v12 = vld [vmem:[#allocation5 + $0x518] sm:$0xff]  ;;  %v109_v13 = vld [vmem:[#allocation5 + $0x30] sm:$0xff] }
  0xd2   :  { %1065 = vmatprep.subr.mxu1 %v150_v33  ;;  %1007 = vmatpush1.msra.mxu0 %v623_v34  ;;  %v265_v14 = vld [vmem:[#allocation5 + $0x510] sm:$0xff]  ;;  %v106_v15 = vld [vmem:[#allocation5 + $0x18] sm:$0xff] }
  0xd3   :  { %1066 = vmatpush1.msra.mxu1 %v149_v35  ;;  %1008 = vmatprep.subr.mxu0 %v620_v36  ;;  %v262_v16 = vld [vmem:[#allocation5 + $0x4f8] sm:$0xff]  ;;  %v105_v17 = vld [vmem:[#allocation5 + $0x10] sm:$0xff] }
  0xd4   :  { %1067 = vmatprep.subr.mxu1 %v146_v37  ;;  %1009 = vmatpush1.msra.mxu0 %v619_v38  ;;  %v261_v18 = vld [vmem:[#allocation5 + $0x4f0] sm:$0xff]  ;;  %v230_v19 = vld [vmem:[#allocation5 + $0x3f8] sm:$0xff] }
  0xd5   :  { %1068 = vmatpush1.msra.mxu1 %v145_v39  ;;  %1010 = vmatprep.subr.mxu0 %v616_v40  ;;  %v258_v20 = vld [vmem:[#allocation5 + $0x4d8] sm:$0xff]  ;;  %v229_v21 = vld [vmem:[#allocation5 + $0x3f0] sm:$0xff] }
  0xd6   :  { %1069 = vmatprep.subr.mxu1 %v142_v41  ;;  %1011 = vmatpush1.msra.mxu0 %v615_v42  ;;  %v257_v22 = vld [vmem:[#allocation5 + $0x4d0] sm:$0xff]  ;;  %v226_v23 = vld [vmem:[#allocation5 + $0x3d8] sm:$0xff] }
  0xd7   :  { %1044 = vmatprep.mubr.f32.mxu0 %v1945_v47  ;;  %1070 = vmatpush1.msra.mxu1 %v141_v43  ;;  %v254_v24 = vld [vmem:[#allocation5 + $0x4b8] sm:$0xff]  ;;  %v225_v25 = vld [vmem:[#allocation5 + $0x3d0] sm:$0xff] }
  0xd8   :  { %1771 = vmatmul.mubr.msk.f32.vlgmr.msra.gmra.mxu0 %vm665_vm0, %v93_v44  ;;  %1071 = vmatprep.subr.mxu1 %v138_v45  ;;  %v253_v26 = vld [vmem:[#allocation5 + $0x4b0] sm:$0xff]  ;;  %v222_v27 = vld [vmem:[#allocation5 + $0x3b8] sm:$0xff] }
  0xd9   :  { %1134 = vmatprep.subr.mxu0 %v294_v46  ;;  %1072 = vmatpush1.msra.mxu1 %v137_v48  ;;  %v250_v28 = vld [vmem:[#allocation5 + $0x498] sm:$0xff]  ;;  %v221_v29 = vld [vmem:[#allocation5 + $0x3b0] sm:$0xff] }
  0xda   :  { %1135 = vmatpush1.msra.mxu0 %v293_v49  ;;  %1073 = vmatprep.subr.mxu1 %v134_v50  ;;  %v249_v30 = vld [vmem:[#allocation5 + $0x490] sm:$0xff]  ;;  %v218_v31 = vld [vmem:[#allocation5 + $0x398] sm:$0xff] }
  0xdb   :  { %1136 = vmatprep.subr.mxu0 %v290_v51  ;;  %1050 = vmatprep.mubr.f32.mxu0 %v1945_v47  ;;  %v246_v32 = vld [vmem:[#allocation5 + $0x478] sm:$0xff]  ;;  %v217_v33 = vld [vmem:[#allocation5 + $0x390] sm:$0xff] }
  0xdc   :  { %1074 = vmatpush1.msra.mxu1 %v133_v52  ;;  %1137 = vmatpush1.msra.mxu0 %v289_v53  ;;  %v245_v34 = vld [vmem:[#allocation5 + $0x470] sm:$0xff]  ;;  %v214_v35 = vld [vmem:[#allocation5 + $0x378] sm:$0xff] }
  0xdd   :  { %1075 = vmatprep.subr.mxu1 %v130_v54  ;;  %1772 = vmatmul.mubr.msk.f32.gmra.mxu0 %vm665_vm0, %v102_v55  ;;  %v242_v36 = vld [vmem:[#allocation5 + $0x458] sm:$0xff]  ;;  %v213_v37 = vld [vmem:[#allocation5 + $0x370] sm:$0xff] }
  0xde   :  { %1138 = vmatprep.subr.mxu0 %v286_v56  ;;  %1076 = vmatpush1.msra.mxu1 %v129_v57  ;;  %v241_v38 = vld [vmem:[#allocation5 + $0x450] sm:$0xff]  ;;  %v210_v39 = vld [vmem:[#allocation5 + $0x358] sm:$0xff] }
  0xdf   :  { %1139 = vmatpush1.msra.mxu0 %v285_v58  ;;  %1077 = vmatprep.subr.mxu1 %v126_v59  ;;  %v238_v40 = vld [vmem:[#allocation5 + $0x438] sm:$0xff]  ;;  %v209_v41 = vld [vmem:[#allocation5 + $0x350] sm:$0xff] }
  0xe0   :  { %1140 = vmatprep.subr.mxu0 %v282_v60  ;;  %1078 = vmatpush1.msra.mxu1 %v125_v61  ;;  %v237_v42 = vld [vmem:[#allocation5 + $0x430] sm:$0xff]  ;;  %v206_v43 = vld [vmem:[#allocation5 + $0x338] sm:$0xff] }
  0xe1   :  { %1141 = vmatpush1.msra.mxu0 %v281_v62  ;;  %1079 = vmatprep.subr.mxu1 %v122_v63  ;;  %v234_v44 = vld [vmem:[#allocation5 + $0x418] sm:$0xff]  ;;  %v205_v45 = vld [vmem:[#allocation5 + $0x330] sm:$0xff] }
  0xe2   :  { %1142 = vmatprep.subr.mxu0 %v278_v0  ;;  %1080 = vmatpush1.msra.mxu1 %v121_v1  ;;  %v233_v46 = vld [vmem:[#allocation5 + $0x410] sm:$0xff]  ;;  %v202_v48 = vld [vmem:[#allocation5 + $0x318] sm:$0xff] }
  0xe3   :  { %1143 = vmatpush1.msra.mxu0 %v277_v2  ;;  %1081 = vmatprep.subr.mxu1 %v118_v3  ;;  %v358_v49 = vld [vmem:[#allocation5 + $0x7f8] sm:$0xff]  ;;  %v201_v50 = vld [vmem:[#allocation5 + $0x310] sm:$0xff] }
  0xe4   :  { %1144 = vmatprep.subr.mxu0 %v274_v4  ;;  %1082 = vmatpush1.msra.mxu1 %v117_v5  ;;  %v357_v51 = vld [vmem:[#allocation5 + $0x7f0] sm:$0xff]  ;;  %v198_v52 = vld [vmem:[#allocation5 + $0x2f8] sm:$0xff] }
  0xe5   :  { %1145 = vmatpush1.msra.mxu0 %v273_v6  ;;  %1083 = vmatprep.subr.mxu1 %v114_v7  ;;  %v354_v53 = vld [vmem:[#allocation5 + $0x7d8] sm:$0xff]  ;;  %v197_v54 = vld [vmem:[#allocation5 + $0x2f0] sm:$0xff] }
  0xe6   :  { %1146 = vmatprep.subr.mxu0 %v270_v8  ;;  %1084 = vmatpush1.msra.mxu1 %v113_v9  ;;  %v353_v55 = vld [vmem:[#allocation5 + $0x7d0] sm:$0xff]  ;;  %v194_v56 = vld [vmem:[#allocation5 + $0x2d8] sm:$0xff] }
  0xe7   :  { %1147 = vmatpush1.msra.mxu0 %v269_v10  ;;  %1085 = vmatprep.subr.mxu1 %v110_v11  ;;  %v350_v57 = vld [vmem:[#allocation5 + $0x7b8] sm:$0xff]  ;;  %v193_v58 = vld [vmem:[#allocation5 + $0x2d0] sm:$0xff] }
  0xe8   :  { %1148 = vmatprep.subr.mxu0 %v266_v12  ;;  %1086 = vmatpush1.msra.mxu1 %v109_v13  ;;  %v349_v59 = vld [vmem:[#allocation5 + $0x7b0] sm:$0xff]  ;;  %v190_v60 = vld [vmem:[#allocation5 + $0x2b8] sm:$0xff] }
  0xe9   :  { %1149 = vmatpush1.msra.mxu0 %v265_v14  ;;  %1087 = vmatprep.subr.mxu1 %v106_v15  ;;  %v346_v61 = vld [vmem:[#allocation5 + $0x798] sm:$0xff]  ;;  %v189_v62 = vld [vmem:[#allocation5 + $0x2b0] sm:$0xff] }
  0xea   :  { %1150 = vmatprep.subr.mxu0 %v262_v16  ;;  %1088 = vmatpush1.msra.mxu1 %v105_v17  ;;  %v345_v63 = vld [vmem:[#allocation5 + $0x790] sm:$0xff]  ;;  %v186_v0 = vld [vmem:[#allocation5 + $0x298] sm:$0xff] }
  0xeb   :  { %1151 = vmatpush1.msra.mxu0 %v261_v18  ;;  %1089 = vmatprep.subr.mxu1 %v230_v19  ;;  %v342_v1 = vld [vmem:[#allocation5 + $0x778] sm:$0xff]  ;;  %v185_v2 = vld [vmem:[#allocation5 + $0x290] sm:$0xff] }
  0xec   :  { %1152 = vmatprep.subr.mxu0 %v258_v20  ;;  %1090 = vmatpush2.msra.mxu1 %v229_v21  ;;  %v341_v3 = vld [vmem:[#allocation5 + $0x770] sm:$0xff]  ;;  %v182_v4 = vld [vmem:[#allocation5 + $0x278] sm:$0xff] }
  0xed   :  { %1153 = vmatpush1.msra.mxu0 %v257_v22  ;;  %1091 = vmatprep.subr.mxu1 %v226_v23  ;;  %v338_v5 = vld [vmem:[#allocation5 + $0x758] sm:$0xff]  ;;  %v181_v6 = vld [vmem:[#allocation5 + $0x270] sm:$0xff] }
  0xee   :  { %1154 = vmatprep.subr.mxu0 %v254_v24  ;;  %1092 = vmatpush2.msra.mxu1 %v225_v25  ;;  %v337_v7 = vld [vmem:[#allocation5 + $0x750] sm:$0xff]  ;;  %v178_v8 = vld [vmem:[#allocation5 + $0x258] sm:$0xff] }
  0xef   :  { %1155 = vmatpush1.msra.mxu0 %v253_v26  ;;  %1093 = vmatprep.subr.mxu1 %v222_v27  ;;  %v334_v9 = vld [vmem:[#allocation5 + $0x738] sm:$0xff]  ;;  %v177_v10 = vld [vmem:[#allocation5 + $0x250] sm:$0xff] }
  0xf0   :  { %1156 = vmatprep.subr.mxu0 %v250_v28  ;;  %1094 = vmatpush2.msra.mxu1 %v221_v29  ;;  %v333_v11 = vld [vmem:[#allocation5 + $0x730] sm:$0xff]  ;;  %v174_v12 = vld [vmem:[#allocation5 + $0x238] sm:$0xff] }
  0xf1   :  { %1157 = vmatpush1.msra.mxu0 %v249_v30  ;;  %1095 = vmatprep.subr.mxu1 %v218_v31  ;;  %v330_v13 = vld [vmem:[#allocation5 + $0x718] sm:$0xff]  ;;  %v173_v14 = vld [vmem:[#allocation5 + $0x230] sm:$0xff] }
  0xf2   :  { %1158 = vmatprep.subr.mxu0 %v246_v32  ;;  %1096 = vmatpush2.msra.mxu1 %v217_v33  ;;  %v329_v15 = vld [vmem:[#allocation5 + $0x710] sm:$0xff]  ;;  %v170_v16 = vld [vmem:[#allocation5 + $0x218] sm:$0xff] }
  0xf3   :  { %1159 = vmatpush1.msra.mxu0 %v245_v34  ;;  %1097 = vmatprep.subr.mxu1 %v214_v35  ;;  %v326_v17 = vld [vmem:[#allocation5 + $0x6f8] sm:$0xff]  ;;  %v169_v18 = vld [vmem:[#allocation5 + $0x210] sm:$0xff] }
  0xf4   :  { %1160 = vmatprep.subr.mxu0 %v242_v36  ;;  %1098 = vmatpush2.msra.mxu1 %v213_v37  ;;  %v325_v19 = vld [vmem:[#allocation5 + $0x6f0] sm:$0xff]  ;;  %v322_v20 = vld [vmem:[#allocation5 + $0x6d8] sm:$0xff] }
  0xf5   :  { %1161 = vmatpush1.msra.mxu0 %v241_v38  ;;  %1099 = vmatprep.subr.mxu1 %v210_v39  ;;  %v422_v21 = vld [vmem:[#allocation5 + $0x9f8] sm:$0xff]  ;;  %v321_v22 = vld [vmem:[#allocation5 + $0x6d0] sm:$0xff] }
  0xf6   :  { %1162 = vmatprep.subr.mxu0 %v238_v40  ;;  %1100 = vmatpush2.msra.mxu1 %v209_v41  ;;  %v421_v23 = vld [vmem:[#allocation5 + $0x9f0] sm:$0xff]  ;;  %v1788_v24 = vld [vmem:[#allocation2 + $0x8] sm:$0xff] }
  0xf7   :  { %1163 = vmatpush1.msra.mxu0 %v237_v42  ;;  %1101 = vmatprep.subr.mxu1 %v206_v43  ;;  %v318_v25 = vld [vmem:[#allocation5 + $0x6b8] sm:$0xff]  ;;  %v1789_v27 = vld [vmem:[#allocation2] sm:$0xff] }
  0xf8   :  { %1164 = vmatprep.subr.mxu0 %v234_v44  ;;  %1102 = vmatpush2.msra.mxu1 %v205_v45  ;;  %v418_v26 = vld [vmem:[#allocation5 + $0x9d8] sm:$0xff]  ;;  %v317_v28 = vld [vmem:[#allocation5 + $0x6b0] sm:$0xff] }
  0xf9   :  { %1165 = vmatpush1.msra.mxu0 %v233_v46  ;;  %1103 = vmatprep.subr.mxu1 %v202_v48  ;;  %v417_v29 = vld [vmem:[#allocation5 + $0x9d0] sm:$0xff]  ;;  %v314_v30 = vld [vmem:[#allocation5 + $0x698] sm:$0xff] }
  0xfa   :  { %1166 = vmatprep.subr.mxu0 %v358_v49  ;;  %1104 = vmatpush2.msra.mxu1 %v201_v50  ;;  %v414_v31 = vld [vmem:[#allocation5 + $0x9b8] sm:$0xff]  ;;  %v313_v32 = vld [vmem:[#allocation5 + $0x690] sm:$0xff] }
  0xfb   :  { %1167 = vmatpush2.msra.mxu0 %v357_v51  ;;  %1105 = vmatprep.subr.mxu1 %v198_v52  ;;  %v413_v33 = vld [vmem:[#allocation5 + $0x9b0] sm:$0xff]  ;;  %v310_v34 = vld [vmem:[#allocation5 + $0x678] sm:$0xff] }
  0xfc   :  { %1168 = vmatprep.subr.mxu0 %v354_v53  ;;  %1106 = vmatpush2.msra.mxu1 %v197_v54  ;;  %v410_v35 = vld [vmem:[#allocation5 + $0x998] sm:$0xff]  ;;  %v309_v36 = vld [vmem:[#allocation5 + $0x670] sm:$0xff]  ;;  %v1790_v53 = vld [vmem:[#allocation2 + $0x18] sm:$0xff] }
  0xfd   :  { %1169 = vmatpush2.msra.mxu0 %v353_v55  ;;  %1107 = vmatprep.subr.mxu1 %v194_v56  ;;  %v409_v37 = vld [vmem:[#allocation5 + $0x990] sm:$0xff]  ;;  %v306_v38 = vld [vmem:[#allocation5 + $0x658] sm:$0xff]  ;;  %v1791_v56 = vld [vmem:[#allocation2 + $0x10] sm:$0xff] }
  0xfe   :  { %1170 = vmatprep.subr.mxu0 %v350_v57  ;;  %1108 = vmatpush2.msra.mxu1 %v193_v58  ;;  %v406_v39 = vld [vmem:[#allocation5 + $0x978] sm:$0xff]  ;;  %v305_v40 = vld [vmem:[#allocation5 + $0x650] sm:$0xff] }
  0xff   :  { %1171 = vmatpush2.msra.mxu0 %v349_v59  ;;  %1109 = vmatprep.subr.mxu1 %v190_v60  ;;  %v405_v41 = vld [vmem:[#allocation5 + $0x970] sm:$0xff]  ;;  %v302_v42 = vld [vmem:[#allocation5 + $0x638] sm:$0xff] }
 0x100   :  { %1172 = vmatprep.subr.mxu0 %v346_v61  ;;  %1110 = vmatpush2.msra.mxu1 %v189_v62  ;;  %v402_v43 = vld [vmem:[#allocation5 + $0x958] sm:$0xff]  ;;  %v301_v44 = vld [vmem:[#allocation5 + $0x630] sm:$0xff] }
 0x101   :  { %1173 = vmatpush2.msra.mxu0 %v345_v63  ;;  %1111 = vmatprep.subr.mxu1 %v186_v0  ;;  %v401_v45 = vld [vmem:[#allocation5 + $0x950] sm:$0xff]  ;;  %v298_v46 = vld [vmem:[#allocation5 + $0x618] sm:$0xff] }
 0x102   :  { %1174 = vmatprep.subr.mxu0 %v342_v1  ;;  %1112 = vmatpush2.msra.mxu1 %v185_v2  ;;  %v398_v48 = vld [vmem:[#allocation5 + $0x938] sm:$0xff]  ;;  %v297_v49 = vld [vmem:[#allocation5 + $0x610] sm:$0xff] }
 0x103   :  { %1175 = vmatpush2.msra.mxu0 %v341_v3  ;;  %1113 = vmatprep.subr.mxu1 %v182_v4  ;;  %v397_v50 = vld [vmem:[#allocation5 + $0x930] sm:$0xff]  ;;  %v394_v51 = vld [vmem:[#allocation5 + $0x918] sm:$0xff] }
 0x104   :  { %1176 = vmatprep.subr.mxu0 %v338_v5  ;;  %1114 = vmatpush2.msra.mxu1 %v181_v6  ;;  %v550_v52 = vld [vmem:[#allocation5 + $0xdf8] sm:$0xff]  ;;  %v393_v54 = vld [vmem:[#allocation5 + $0x910] sm:$0xff] }
 0x105   :  { %1177 = vmatpush2.msra.mxu0 %v337_v7  ;;  %1115 = vmatprep.subr.mxu1 %v178_v8  ;;  %v549_v55 = vld [vmem:[#allocation5 + $0xdf0] sm:$0xff]  ;;  %v390_v57 = vld [vmem:[#allocation5 + $0x8f8] sm:$0xff] }
 0x106   :  { %1178 = vmatprep.subr.mxu0 %v334_v9  ;;  %1116 = vmatpush2.msra.mxu1 %v177_v10  ;;  %v546_v58 = vld [vmem:[#allocation5 + $0xdd8] sm:$0xff]  ;;  %v389_v59 = vld [vmem:[#allocation5 + $0x8f0] sm:$0xff] }
 0x107   :  { %1179 = vmatpush2.msra.mxu0 %v333_v11  ;;  %1117 = vmatprep.subr.mxu1 %v174_v12  ;;  %v545_v60 = vld [vmem:[#allocation5 + $0xdd0] sm:$0xff]  ;;  %v386_v61 = vld [vmem:[#allocation5 + $0x8d8] sm:$0xff] }
 0x108   :  { %1180 = vmatprep.subr.mxu0 %v330_v13  ;;  %1118 = vmatpush2.msra.mxu1 %v173_v14  ;;  %v542_v62 = vld [vmem:[#allocation5 + $0xdb8] sm:$0xff]  ;;  %v385_v63 = vld [vmem:[#allocation5 + $0x8d0] sm:$0xff] }
 0x109   :  { %1181 = vmatpush2.msra.mxu0 %v329_v15  ;;  %1119 = vmatprep.subr.mxu1 %v170_v16  ;;  %v541_v0 = vld [vmem:[#allocation5 + $0xdb0] sm:$0xff]  ;;  %v382_v1 = vld [vmem:[#allocation5 + $0x8b8] sm:$0xff] }
 0x10a   :  { %1182 = vmatprep.subr.mxu0 %v326_v17  ;;  %1120 = vmatpush2.msra.mxu1 %v169_v18  ;;  %v538_v2 = vld [vmem:[#allocation5 + $0xd98] sm:$0xff]  ;;  %v381_v3 = vld [vmem:[#allocation5 + $0x8b0] sm:$0xff] }
 0x10b   :  { %1183 = vmatpush2.msra.mxu0 %v325_v19  ;;  %1121 = vmatprep.mubr.f32.mxu1 %v1788_v24  ;;  %v537_v4 = vld [vmem:[#allocation5 + $0xd90] sm:$0xff]  ;;  %v378_v5 = vld [vmem:[#allocation5 + $0x898] sm:$0xff] }
 0x10c   :  { %1184 = vmatprep.subr.mxu0 %v322_v20  ;;  %1211 = vmatprep.subr.mxu1 %v422_v21  ;;  %v534_v6 = vld [vmem:[#allocation5 + $0xd78] sm:$0xff]  ;;  %v377_v7 = vld [vmem:[#allocation5 + $0x890] sm:$0xff] }
 0x10d   :  { %1122 = vmatmul.mubr.f32.vlgmr.msra.gmra.mxu1 %v1789_v27  ;;  %1185 = vmatpush2.msra.mxu0 %v321_v22  ;;  %v533_v8 = vld [vmem:[#allocation5 + $0xd70] sm:$0xff]  ;;  %v374_v9 = vld [vmem:[#allocation5 + $0x878] sm:$0xff] }
 0x10e   :  { %1212 = vmatpush1.msra.mxu1 %v421_v23  ;;  %1186 = vmatprep.subr.mxu0 %v318_v25  ;;  %v530_v10 = vld [vmem:[#allocation5 + $0xd58] sm:$0xff]  ;;  %v373_v11 = vld [vmem:[#allocation5 + $0x870] sm:$0xff] }
 0x10f   :  { %1213 = vmatprep.subr.mxu1 %v418_v26  ;;  %1187 = vmatpush2.msra.mxu0 %v317_v28  ;;  %v529_v12 = vld [vmem:[#allocation5 + $0xd50] sm:$0xff]  ;;  %v370_v13 = vld [vmem:[#allocation5 + $0x858] sm:$0xff] }
 0x110   :  { %1214 = vmatpush1.msra.mxu1 %v417_v29  ;;  %1188 = vmatprep.subr.mxu0 %v314_v30  ;;  %v526_v14 = vld [vmem:[#allocation5 + $0xd38] sm:$0xff]  ;;  %v369_v15 = vld [vmem:[#allocation5 + $0x850] sm:$0xff] }
 0x111   :  { %1215 = vmatprep.subr.mxu1 %v414_v31  ;;  %1189 = vmatpush2.msra.mxu0 %v313_v32  ;;  %v525_v16 = vld [vmem:[#allocation5 + $0xd30] sm:$0xff]  ;;  %v366_v17 = vld [vmem:[#allocation5 + $0x838] sm:$0xff] }
 0x112   :  { %1216 = vmatpush1.msra.mxu1 %v413_v33  ;;  %1190 = vmatprep.subr.mxu0 %v310_v34  ;;  %v522_v18 = vld [vmem:[#allocation5 + $0xd18] sm:$0xff]  ;;  %v365_v19 = vld [vmem:[#allocation5 + $0x830] sm:$0xff] }
 0x113   :  { %1217 = vmatprep.subr.mxu1 %v410_v35  ;;  %1191 = vmatpush2.msra.mxu0 %v309_v36  ;;  %v521_v20 = vld [vmem:[#allocation5 + $0xd10] sm:$0xff]  ;;  %v362_v21 = vld [vmem:[#allocation5 + $0x818] sm:$0xff] }
 0x114   :  { %1218 = vmatpush1.msra.mxu1 %v409_v37  ;;  %1192 = vmatprep.subr.mxu0 %v306_v38  ;;  %v518_v22 = vld [vmem:[#allocation5 + $0xcf8] sm:$0xff]  ;;  %v361_v23 = vld [vmem:[#allocation5 + $0x810] sm:$0xff] }
 0x115   :  { %1219 = vmatprep.subr.mxu1 %v406_v39  ;;  %1193 = vmatpush2.msra.mxu0 %v305_v40  ;;  %v517_v24 = vld [vmem:[#allocation5 + $0xcf0] sm:$0xff]  ;;  %v486_v25 = vld [vmem:[#allocation5 + $0xbf8] sm:$0xff] }
 0x116   :  { %1220 = vmatpush1.msra.mxu1 %v405_v41  ;;  %1194 = vmatprep.subr.mxu0 %v302_v42  ;;  %v514_v26 = vld [vmem:[#allocation5 + $0xcd8] sm:$0xff]  ;;  %v485_v27 = vld [vmem:[#allocation5 + $0xbf0] sm:$0xff] }
 0x117   :  { %1221 = vmatprep.subr.mxu1 %v402_v43  ;;  %1195 = vmatpush2.msra.mxu0 %v301_v44  ;;  %v513_v28 = vld [vmem:[#allocation5 + $0xcd0] sm:$0xff]  ;;  %v482_v29 = vld [vmem:[#allocation5 + $0xbd8] sm:$0xff] }
 0x118   :  { %1222 = vmatpush1.msra.mxu1 %v401_v45  ;;  %1196 = vmatprep.subr.mxu0 %v298_v46  ;;  %v510_v30 = vld [vmem:[#allocation5 + $0xcb8] sm:$0xff]  ;;  %v481_v31 = vld [vmem:[#allocation5 + $0xbd0] sm:$0xff] }
 0x119   :  { %1223 = vmatprep.subr.mxu1 %v398_v48  ;;  %1197 = vmatpush2.msra.mxu0 %v297_v49  ;;  %v509_v32 = vld [vmem:[#allocation5 + $0xcb0] sm:$0xff]  ;;  %v478_v33 = vld [vmem:[#allocation5 + $0xbb8] sm:$0xff] }
 0x11a   :  { %1198 = vmatprep.mubr.f32.mxu0 %v1790_v53  ;;  %1224 = vmatpush1.msra.mxu1 %v397_v50  ;;  %v506_v34 = vld [vmem:[#allocation5 + $0xc98] sm:$0xff]  ;;  %v477_v35 = vld [vmem:[#allocation5 + $0xbb0] sm:$0xff] }
 0x11b   :  { %1199 = vmatmul.mubr.f32.vlgmr.msra.gmra.mxu0 %v1791_v56  ;;  %1225 = vmatprep.subr.mxu1 %v394_v51  ;;  %v505_v36 = vld [vmem:[#allocation5 + $0xc90] sm:$0xff]  ;;  %v474_v37 = vld [vmem:[#allocation5 + $0xb98] sm:$0xff] }
 0x11c   :  { %1288 = vmatprep.subr.mxu0 %v550_v52  ;;  %1226 = vmatpush1.msra.mxu1 %v393_v54  ;;  %v502_v38 = vld [vmem:[#allocation5 + $0xc78] sm:$0xff]  ;;  %v473_v39 = vld [vmem:[#allocation5 + $0xb90] sm:$0xff] }
 0x11d   :  { %1289 = vmatpush1.msra.mxu0 %v549_v55  ;;  %1227 = vmatprep.subr.mxu1 %v390_v57  ;;  %v501_v40 = vld [vmem:[#allocation5 + $0xc70] sm:$0xff]  ;;  %v470_v41 = vld [vmem:[#allocation5 + $0xb78] sm:$0xff] }
 0x11e   :  { %1290 = vmatprep.subr.mxu0 %v546_v58  ;;  %1228 = vmatpush1.msra.mxu1 %v389_v59  ;;  %v498_v42 = vld [vmem:[#allocation5 + $0xc58] sm:$0xff]  ;;  %v469_v43 = vld [vmem:[#allocation5 + $0xb70] sm:$0xff] }
 0x11f   :  { %1291 = vmatpush1.msra.mxu0 %v545_v60  ;;  %1229 = vmatprep.subr.mxu1 %v386_v61  ;;  %v497_v44 = vld [vmem:[#allocation5 + $0xc50] sm:$0xff]  ;;  %v466_v45 = vld [vmem:[#allocation5 + $0xb58] sm:$0xff] }
 0x120   :  { %1292 = vmatprep.subr.mxu0 %v542_v62  ;;  %1230 = vmatpush1.msra.mxu1 %v385_v63  ;;  %v494_v46 = vld [vmem:[#allocation5 + $0xc38] sm:$0xff]  ;;  %v465_v48 = vld [vmem:[#allocation5 + $0xb50] sm:$0xff] }
 0x121   :  { %1293 = vmatpush1.msra.mxu0 %v541_v0  ;;  %1231 = vmatprep.subr.mxu1 %v382_v1  ;;  %v493_v49 = vld [vmem:[#allocation5 + $0xc30] sm:$0xff]  ;;  %v462_v50 = vld [vmem:[#allocation5 + $0xb38] sm:$0xff] }
 0x122   :  { %1294 = vmatprep.subr.mxu0 %v538_v2  ;;  %1232 = vmatpush1.msra.mxu1 %v381_v3  ;;  %v490_v51 = vld [vmem:[#allocation5 + $0xc18] sm:$0xff]  ;;  %v461_v52 = vld [vmem:[#allocation5 + $0xb30] sm:$0xff] }
 0x123   :  { %1295 = vmatpush1.msra.mxu0 %v537_v4  ;;  %1233 = vmatprep.subr.mxu1 %v378_v5  ;;  %v489_v53 = vld [vmem:[#allocation5 + $0xc10] sm:$0xff]  ;;  %v458_v54 = vld [vmem:[#allocation5 + $0xb18] sm:$0xff] }
 0x124   :  { %1296 = vmatprep.subr.mxu0 %v534_v6  ;;  %1234 = vmatpush1.msra.mxu1 %v377_v7  ;;  %v614_v55 = vld [vmem:[#allocation5 + $0xff8] sm:$0xff]  ;;  %v457_v56 = vld [vmem:[#allocation5 + $0xb10] sm:$0xff] }
 0x125   :  { %1297 = vmatpush1.msra.mxu0 %v533_v8  ;;  %1235 = vmatprep.subr.mxu1 %v374_v9  ;;  %v613_v57 = vld [vmem:[#allocation5 + $0xff0] sm:$0xff]  ;;  %v454_v58 = vld [vmem:[#allocation5 + $0xaf8] sm:$0xff] }
 0x126   :  { %1298 = vmatprep.subr.mxu0 %v530_v10  ;;  %1236 = vmatpush1.msra.mxu1 %v373_v11  ;;  %v610_v59 = vld [vmem:[#allocation5 + $0xfd8] sm:$0xff]  ;;  %v453_v60 = vld [vmem:[#allocation5 + $0xaf0] sm:$0xff] }
 0x127   :  { %1299 = vmatpush1.msra.mxu0 %v529_v12  ;;  %1237 = vmatprep.subr.mxu1 %v370_v13  ;;  %v609_v61 = vld [vmem:[#allocation5 + $0xfd0] sm:$0xff]  ;;  %v450_v62 = vld [vmem:[#allocation5 + $0xad8] sm:$0xff] }
 0x128   :  { %1300 = vmatprep.subr.mxu0 %v526_v14  ;;  %1238 = vmatpush1.msra.mxu1 %v369_v15  ;;  %v606_v63 = vld [vmem:[#allocation5 + $0xfb8] sm:$0xff]  ;;  %v449_v0 = vld [vmem:[#allocation5 + $0xad0] sm:$0xff] }
 0x129   :  { %1301 = vmatpush1.msra.mxu0 %v525_v16  ;;  %1239 = vmatprep.subr.mxu1 %v366_v17  ;;  %v605_v1 = vld [vmem:[#allocation5 + $0xfb0] sm:$0xff]  ;;  %v446_v2 = vld [vmem:[#allocation5 + $0xab8] sm:$0xff] }
 0x12a   :  { %1302 = vmatprep.subr.mxu0 %v522_v18  ;;  %1240 = vmatpush1.msra.mxu1 %v365_v19  ;;  %v602_v3 = vld [vmem:[#allocation5 + $0xf98] sm:$0xff]  ;;  %v445_v4 = vld [vmem:[#allocation5 + $0xab0] sm:$0xff] }
 0x12b   :  { %1303 = vmatpush1.msra.mxu0 %v521_v20  ;;  %1241 = vmatprep.subr.mxu1 %v362_v21  ;;  %v601_v5 = vld [vmem:[#allocation5 + $0xf90] sm:$0xff]  ;;  %v442_v6 = vld [vmem:[#allocation5 + $0xa98] sm:$0xff]  ;;  %v1792_v20 = vld [vmem:[#allocation2 + $0x50] sm:$0xff] }
 0x12c   :  { %1304 = vmatprep.subr.mxu0 %v518_v22  ;;  %1242 = vmatpush1.msra.mxu1 %v361_v23  ;;  %v598_v7 = vld [vmem:[#allocation5 + $0xf78] sm:$0xff]  ;;  %v441_v8 = vld [vmem:[#allocation5 + $0xa90] sm:$0xff] }
 0x12d   :  { %1305 = vmatpush1.msra.mxu0 %v517_v24  ;;  %1243 = vmatprep.subr.mxu1 %v486_v25  ;;  %v597_v9 = vld [vmem:[#allocation5 + $0xf70] sm:$0xff]  ;;  %v438_v10 = vld [vmem:[#allocation5 + $0xa78] sm:$0xff] }
 0x12e   :  { %1306 = vmatprep.subr.mxu0 %v514_v26  ;;  %1244 = vmatpush2.msra.mxu1 %v485_v27  ;;  %v594_v11 = vld [vmem:[#allocation5 + $0xf58] sm:$0xff]  ;;  %v437_v12 = vld [vmem:[#allocation5 + $0xa70] sm:$0xff] }
 0x12f   :  { %1307 = vmatpush1.msra.mxu0 %v513_v28  ;;  %1245 = vmatprep.subr.mxu1 %v482_v29  ;;  %v593_v13 = vld [vmem:[#allocation5 + $0xf50] sm:$0xff]  ;;  %v434_v14 = vld [vmem:[#allocation5 + $0xa58] sm:$0xff]  ;;  %v1795_v29 = vld [vmem:[#allocation2 + $0x58] sm:$0xff] }
 0x130   :  { %1308 = vmatprep.subr.mxu0 %v510_v30  ;;  %1246 = vmatpush2.msra.mxu1 %v481_v31  ;;  %v590_v15 = vld [vmem:[#allocation5 + $0xf38] sm:$0xff]  ;;  %v433_v16 = vld [vmem:[#allocation5 + $0xa50] sm:$0xff] }
 0x131   :  { %1309 = vmatpush1.msra.mxu0 %v509_v32  ;;  %1247 = vmatprep.subr.mxu1 %v478_v33  ;;  %v589_v17 = vld [vmem:[#allocation5 + $0xf30] sm:$0xff]  ;;  %v430_v18 = vld [vmem:[#allocation5 + $0xa38] sm:$0xff] }
 0x132   :  { %1310 = vmatprep.subr.mxu0 %v506_v34  ;;  %1248 = vmatpush2.msra.mxu1 %v477_v35  ;;  %v586_v19 = vld [vmem:[#allocation5 + $0xf18] sm:$0xff]  ;;  %v429_v21 = vld [vmem:[#allocation5 + $0xa30] sm:$0xff] }
 0x133   :  { %1311 = vmatpush1.msra.mxu0 %v505_v36  ;;  %1249 = vmatprep.subr.mxu1 %v474_v37  ;;  %v585_v22 = vld [vmem:[#allocation5 + $0xf10] sm:$0xff]  ;;  %v1793_v23 = vld [vmem:[#allocation2 + $0x48] sm:$0xff] }
 0x134   :  { %1312 = vmatprep.subr.mxu0 %v502_v38  ;;  %1250 = vmatpush2.msra.mxu1 %v473_v39  ;;  %v426_v24 = vld [vmem:[#allocation5 + $0xa18] sm:$0xff]  ;;  %v425_v26 = vld [vmem:[#allocation5 + $0xa10] sm:$0xff] }
 0x135   :  { %1313 = vmatpush1.msra.mxu0 %v501_v40  ;;  %1251 = vmatprep.subr.mxu1 %v470_v41  ;;  %v582_v25 = vld [vmem:[#allocation5 + $0xef8] sm:$0xff]  ;;  %v1794_v27 = vld [vmem:[#allocation2 + $0x60] sm:$0xff] }
 0x136   :  { %1314 = vmatprep.subr.mxu0 %v498_v42  ;;  %1252 = vmatpush2.msra.mxu1 %v469_v43  ;;  %v581_v28 = vld [vmem:[#allocation5 + $0xef0] sm:$0xff]  ;;  %v578_v30 = vld [vmem:[#allocation5 + $0xed8] sm:$0xff]  ;;  %v1798_v42 = vld [vmem:[#allocation2 + $0x70] sm:$0xff] }
 0x137   :  { %1315 = vmatpush1.msra.mxu0 %v497_v44  ;;  %1253 = vmatprep.subr.mxu1 %v466_v45  ;;  %v642_v31 = vld [vmem:[#allocation5 + $0x10d8] sm:$0xff]  ;;  %v577_v33 = vld [vmem:[#allocation5 + $0xed0] sm:$0xff] }
 0x138   :  { %1316 = vmatprep.subr.mxu0 %v494_v46  ;;  %1254 = vmatpush2.msra.mxu1 %v465_v48  ;;  %v1796_v32 = vld [vmem:[#allocation2 + $0x28] sm:$0xff]  ;;  %v641_v34 = vld [vmem:[#allocation5 + $0x10d0] sm:$0xff] }
 0x139   :  { %1317 = vmatpush1.msra.mxu0 %v493_v49  ;;  %1255 = vmatprep.subr.mxu1 %v462_v50  ;;  %v1797_v35 = vld [vmem:[#allocation2 + $0x20] sm:$0xff]  ;;  %v574_v36 = vld [vmem:[#allocation5 + $0xeb8] sm:$0xff] }
 0x13a   :  { %1318 = vmatprep.subr.mxu0 %v490_v51  ;;  %1256 = vmatpush2.msra.mxu1 %v461_v52  ;;  %v638_v37 = vld [vmem:[#allocation5 + $0x10b8] sm:$0xff]  ;;  %v573_v38 = vld [vmem:[#allocation5 + $0xeb0] sm:$0xff] }
 0x13b   :  { %1319 = vmatpush1.msra.mxu0 %v489_v53  ;;  %1257 = vmatprep.subr.mxu1 %v458_v54  ;;  %v637_v39 = vld [vmem:[#allocation5 + $0x10b0] sm:$0xff]  ;;  %v570_v40 = vld [vmem:[#allocation5 + $0xe98] sm:$0xff] }
 0x13c   :  { %1320 = vmatprep.subr.mxu0 %v614_v55  ;;  %1258 = vmatpush2.msra.mxu1 %v457_v56  ;;  %v634_v41 = vld [vmem:[#allocation5 + $0x1098] sm:$0xff]  ;;  %v569_v43 = vld [vmem:[#allocation5 + $0xe90] sm:$0xff] }
 0x13d   :  { %1321 = vmatpush2.msra.mxu0 %v613_v57  ;;  %1259 = vmatprep.subr.mxu1 %v454_v58  ;;  %v633_v44 = vld [vmem:[#allocation5 + $0x1090] sm:$0xff]  ;;  %v566_v45 = vld [vmem:[#allocation5 + $0xe78] sm:$0xff] }
 0x13e   :  { %1322 = vmatprep.subr.mxu0 %v610_v59  ;;  %1260 = vmatpush2.msra.mxu1 %v453_v60  ;;  %v630_v46 = vld [vmem:[#allocation5 + $0x1078] sm:$0xff]  ;;  %v565_v49 = vld [vmem:[#allocation5 + $0xe70] sm:$0xff] }
 0x13f   :  { %1323 = vmatpush2.msra.mxu0 %v609_v61  ;;  %1261 = vmatprep.subr.mxu1 %v450_v62  ;;  %v1799_v48 = vld [vmem:[#allocation2 + $0x68] sm:$0xff]  ;;  %v629_v50 = vld [vmem:[#allocation5 + $0x1070] sm:$0xff] }
 0x140   :  { %1324 = vmatprep.subr.mxu0 %v606_v63  ;;  %1262 = vmatpush2.msra.mxu1 %v449_v0  ;;  %v562_v51 = vld [vmem:[#allocation5 + $0xe58] sm:$0xff]  ;;  %v561_v53 = vld [vmem:[#allocation5 + $0xe50] sm:$0xff]  ;;  %v1800_v63 = vld [vmem:[#allocation2 + $0x38] sm:$0xff] }
 0x141   :  { %1325 = vmatpush2.msra.mxu0 %v605_v1  ;;  %1263 = vmatprep.subr.mxu1 %v446_v2  ;;  %v626_v52 = vld [vmem:[#allocation5 + $0x1058] sm:$0xff]  ;;  %v625_v54 = vld [vmem:[#allocation5 + $0x1050] sm:$0xff]  ;;  %v1801_v2 = vld [vmem:[#allocation2 + $0x30] sm:$0xff] }
 0x142   :  { %1326 = vmatprep.subr.mxu0 %v602_v3  ;;  %1264 = vmatpush2.msra.mxu1 %v445_v4  ;;  %v558_v55 = vld [vmem:[#allocation5 + $0xe38] sm:$0xff]  ;;  %v557_v57 = vld [vmem:[#allocation5 + $0xe30] sm:$0xff] }
 0x143   :  { %1327 = vmatpush2.msra.mxu0 %v601_v5  ;;  %1265 = vmatprep.subr.mxu1 %v442_v6  ;;  %v622_v56 = vld [vmem:[#allocation5 + $0x1038] sm:$0xff]  ;;  %v621_v58 = vld [vmem:[#allocation5 + $0x1030] sm:$0xff] }
 0x144   :  { %1328 = vmatprep.subr.mxu0 %v598_v7  ;;  %1266 = vmatpush2.msra.mxu1 %v441_v8  ;;  %v554_v59 = vld [vmem:[#allocation5 + $0xe18] sm:$0xff]  ;;  %v553_v61 = vld [vmem:[#allocation5 + $0xe10] sm:$0xff] }
 0x145   :  { %1329 = vmatpush2.msra.mxu0 %v597_v9  ;;  %1267 = vmatprep.subr.mxu1 %v438_v10  ;;  %v618_v60 = vld [vmem:[#allocation5 + $0x1018] sm:$0xff]  ;;  %v617_v62 = vld [vmem:[#allocation5 + $0x1010] sm:$0xff]  ;;  %v1478_v9 = vld [vmem:[#allocation8 + $0xe0] sm:$0xff] }
 0x146   :  { %1330 = vmatprep.subr.mxu0 %v594_v11  ;;  %1268 = vmatpush2.msra.mxu1 %v437_v12  ;;  %v1481_v0 = vld [vmem:[#allocation8 + $0xf8] sm:$0xff]  ;;  %v1802_v3 = vld [vmem:[#allocation2 + $0x40] sm:$0xff]  ;;  %v1542_v10 = vld [vmem:[#allocation8 + $0x2e0] sm:$0xff] }
 0x147   :  { %1331 = vmatpush2.msra.mxu0 %v593_v13  ;;  %1269 = vmatprep.subr.mxu1 %v434_v14  ;;  %v1545_v1 = vld [vmem:[#allocation8 + $0x2f8] sm:$0xff]  ;;  %v1480_v4 = vld [vmem:[#allocation8 + $0xf0] sm:$0xff]  ;;  %v1479_v7 = vld [vmem:[#allocation8 + $0xe8] sm:$0xff] }
 0x148   :  { %1332 = vmatprep.subr.mxu0 %v590_v15  ;;  %1127 = vmatprep.mubr.f32.mxu1 %v1792_v20  ;;  %v1544_v5 = vld [vmem:[#allocation8 + $0x2f0] sm:$0xff]  ;;  %v1543_v8 = vld [vmem:[#allocation8 + $0x2e8] sm:$0xff]  ;;  %v1477_v13 = vld [vmem:[#allocation8 + $0xd8] sm:$0xff] }
 0x149   :  { %1270 = vmatpush2.msra.mxu1 %v433_v16  ;;  %1333 = vmatpush2.msra.mxu0 %v589_v17  ;;  %v1803_v6 = vld [vmem:[#allocation2 + $0x80] sm:$0xff]  ;;  %v1804_v11 = vld [vmem:[#allocation2 + $0x78] sm:$0xff]  ;;  %v1805_v12 = vld [vmem:[#allocation2 + $0x88] sm:$0xff] }
 0x14a   :  { %1128 = vmatmul.mubr.f32.gmra.mxu1 %v1793_v23  ;;  %1271 = vmatprep.subr.mxu1 %v430_v18  ;;  %v1541_v14 = vld [vmem:[#allocation8 + $0x2d8] sm:$0xff]  ;;  %v1476_v15 = vld [vmem:[#allocation8 + $0xd0] sm:$0xff]  ;;  %v1539_v17 = vld [vmem:[#allocation8 + $0x2c8] sm:$0xff] }
 0x14b   :  { %1334 = vmatprep.subr.mxu0 %v586_v19  ;;  %1272 = vmatpush2.msra.mxu1 %v429_v21  ;;  %v1540_v16 = vld [vmem:[#allocation8 + $0x2d0] sm:$0xff]  ;;  %v1474_v18 = vld [vmem:[#allocation8 + $0xc0] sm:$0xff]  ;;  %v1473_v20 = vld [vmem:[#allocation8 + $0xb8] sm:$0xff] }
 0x14c   :  { %1335 = vmatpush2.msra.mxu0 %v585_v22  ;;  %1204 = vmatprep.mubr.f32.mxu0 %v1794_v27  ;;  %v1538_v19 = vld [vmem:[#allocation8 + $0x2c0] sm:$0xff]  ;;  %v1537_v21 = vld [vmem:[#allocation8 + $0x2b8] sm:$0xff]  ;;  %v1472_v22 = vld [vmem:[#allocation8 + $0xb0] sm:$0xff] }
 0x14d   :  { %1273 = vmatprep.subr.mxu1 %v426_v24  ;;  %1336 = vmatprep.subr.mxu0 %v582_v25  ;;  %v1536_v23 = vld [vmem:[#allocation8 + $0x2b0] sm:$0xff]  ;;  %v1471_v24 = vld [vmem:[#allocation8 + $0xa8] sm:$0xff]  ;;  %v1534_v27 = vld [vmem:[#allocation8 + $0x2a0] sm:$0xff] }
 0x14e   :  { %1205 = vmatmul.mubr.f32.gmra.mxu0 %v1795_v29  ;;  %1274 = vmatpush2.msra.mxu1 %v425_v26  ;;  %v1535_v25 = vld [vmem:[#allocation8 + $0x2a8] sm:$0xff]  ;;  %v1470_v26 = vld [vmem:[#allocation8 + $0xa0] sm:$0xff]  ;;  %v1533_v29 = vld [vmem:[#allocation8 + $0x298] sm:$0xff] }
 0x14f   :  { %1275 = vmatprep.mubr.f32.mxu1 %v1796_v32  ;;  %1337 = vmatpush2.msra.mxu0 %v581_v28  ;;  %v1469_v28 = vld [vmem:[#allocation8 + $0x98] sm:$0xff]  ;;  %v1467_v32 = vld [vmem:[#allocation8 + $0x88] sm:$0xff] }
 0x150   :  { %1276 = vmatmul.mubr.f32.vlgmr.msra.gmra.mxu1 %v1797_v35  ;;  %1338 = vmatprep.subr.mxu0 %v578_v30  ;;  %v1468_v30 = vld [vmem:[#allocation8 + $0x90] sm:$0xff]  ;;  %v1530_v35 = vld [vmem:[#allocation8 + $0x280] sm:$0xff] }
 0x151   :  { %1383 = vmatprep.subr.mxu1 %v642_v31  ;;  %1339 = vmatpush2.msra.mxu0 %v577_v33  ;;  %v1532_v31 = vld [vmem:[#allocation8 + $0x290] sm:$0xff]  ;;  %v1531_v33 = vld [vmem:[#allocation8 + $0x288] sm:$0xff] }
 0x152   :  { %1384 = vmatpush1.msra.mxu1 %v641_v34  ;;  %1340 = vmatprep.subr.mxu0 %v574_v36  ;;  %v1466_v34 = vld [vmem:[#allocation8 + $0x80] sm:$0xff]  ;;  %v1465_v36 = vld [vmem:[#allocation8 + $0x78] sm:$0xff] }
 0x153   :  { %1385 = vmatprep.subr.mxu1 %v638_v37  ;;  %1281 = vmatprep.mubr.f32.mxu1 %v1798_v42  ;;  %v1529_v37 = vld [vmem:[#allocation8 + $0x278] sm:$0xff]  ;;  %v1462_v42 = vld [vmem:[#allocation8 + $0x60] sm:$0xff] }
 0x154   :  { %1341 = vmatpush2.msra.mxu0 %v573_v38  ;;  %1386 = vmatpush1.msra.mxu1 %v637_v39  ;;  %v1464_v38 = vld [vmem:[#allocation8 + $0x70] sm:$0xff] }
 0x155   :  { %1342 = vmatprep.subr.mxu0 %v570_v40  ;;  %1282 = vmatmul.mubr.f32.gmra.mxu1 %v1799_v48  ;;  %v1528_v39 = vld [vmem:[#allocation8 + $0x270] sm:$0xff]  ;;  %v1463_v40 = vld [vmem:[#allocation8 + $0x68] sm:$0xff] }
 0x156   :  { %1387 = vmatprep.subr.mxu1 %v634_v41  ;;  %1343 = vmatpush2.msra.mxu0 %v569_v43  ;;  %v1527_v41 = vld [vmem:[#allocation8 + $0x268] sm:$0xff]  ;;  %v1526_v43 = vld [vmem:[#allocation8 + $0x260] sm:$0xff]  ;;  %v1524_v48 = vld [vmem:[#allocation8 + $0x250] sm:$0xff] }
 0x157   :  { %1388 = vmatpush1.msra.mxu1 %v633_v44  ;;  %1344 = vmatprep.subr.mxu0 %v566_v45  ;;  %v1461_v44 = vld [vmem:[#allocation8 + $0x58] sm:$0xff] }
 0x158   :  { %1389 = vmatprep.subr.mxu1 %v630_v46  ;;  %1345 = vmatpush2.msra.mxu0 %v565_v49  ;;  %v1525_v45 = vld [vmem:[#allocation8 + $0x258] sm:$0xff]  ;;  %v1460_v46 = vld [vmem:[#allocation8 + $0x50] sm:$0xff]  ;;  %v1459_v49 = vld [vmem:[#allocation8 + $0x48] sm:$0xff] }
 0x159   :  { %1390 = vmatpush1.msra.mxu1 %v629_v50  ;;  %1346 = vmatprep.subr.mxu0 %v562_v51  ;;  %v1523_v50 = vld [vmem:[#allocation8 + $0x248] sm:$0xff]  ;;  %v1458_v51 = vld [vmem:[#allocation8 + $0x40] sm:$0xff] }
 0x15a   :  { %1391 = vmatprep.subr.mxu1 %v626_v52  ;;  %1347 = vmatpush2.msra.mxu0 %v561_v53  ;;  %v1522_v52 = vld [vmem:[#allocation8 + $0x240] sm:$0xff]  ;;  %v1457_v53 = vld [vmem:[#allocation8 + $0x38] sm:$0xff] }
 0x15b   :  { %1392 = vmatpush1.msra.mxu1 %v625_v54  ;;  %1348 = vmatprep.subr.mxu0 %v558_v55  ;;  %v1521_v54 = vld [vmem:[#allocation8 + $0x238] sm:$0xff]  ;;  %v1456_v55 = vld [vmem:[#allocation8 + $0x30] sm:$0xff] }
 0x15c   :  { %1393 = vmatprep.subr.mxu1 %v622_v56  ;;  %1349 = vmatpush2.msra.mxu0 %v557_v57  ;;  %v1520_v56 = vld [vmem:[#allocation8 + $0x230] sm:$0xff]  ;;  %v1455_v57 = vld [vmem:[#allocation8 + $0x28] sm:$0xff] }
 0x15d   :  { %1394 = vmatpush1.msra.mxu1 %v621_v58  ;;  %1350 = vmatprep.subr.mxu0 %v554_v59  ;;  %v1519_v58 = vld [vmem:[#allocation8 + $0x228] sm:$0xff]  ;;  %v2003_v59 = vpop.f32.mrf.mxu0 }
 0x15e   :  { %1395 = vmatprep.subr.mxu1 %v618_v60  ;;  %1351 = vmatpush2.msra.mxu0 %v553_v61  ;;  %v1454_v60 = vld [vmem:[#allocation8 + $0x20] sm:$0xff] }
 0x15f   :  { %1352 = vmatprep.mubr.f32.mxu0 %v1800_v63  ;;  %1396 = vmatpush1.msra.mxu1 %v617_v62  ;;  %v1518_v61 = vld [vmem:[#allocation8 + $0x220] sm:$0xff]  ;;  %v1453_v62 = vld [vmem:[#allocation8 + $0x18] sm:$0xff] }
 0x160   :  { %1429 = vmatprep.mubr.f32.mxu1 %v1945_v47  ;;  %1353 = vmatmul.mubr.f32.vlgmr.msra.gmra.mxu0 %v1801_v2  ;;  %v1517_v63 = vld [vmem:[#allocation8 + $0x218] sm:$0xff]  ;;  %v645_v2 = vlaneseq }
 0x161   :  { %1773 = vmatmul.mubr.msk.f32.vlgmr.msra.gmra.mxu1 %vm665_vm0, %v1802_v3  ;;  %1358 = vmatprep.mubr.f32.mxu0 %v1803_v6  ;;  %v1451_v3 = vld [vmem:[#allocation8 + $0x8] sm:$0xff]  ;;  %v1450_v6 = vld [vmem:[#allocation8] sm:$0xff] }
 0x162   :  { %1435 = vmatprep.mubr.f32.mxu1 %v1945_v47  ;;  %1590 = vmatprep.subr.mxu0 %v1481_v0  ;;  %v1475_v47 = vld [vmem:[#allocation8 + $0xc8] sm:$0xff]  ;;  %v1452_v0 = vld [vmem:[#allocation8 + $0x10] sm:$0xff] }
 0x163   :  { %1667 = vmatprep.subr.mxu1 %v1545_v1  ;;  %1591 = vmatpush1.msra.mxu0 %v1480_v4  ;;  %v1516_v1 = vld [vmem:[#allocation8 + $0x210] sm:$0xff]  ;;  %v1515_v4 = vld [vmem:[#allocation8 + $0x208] sm:$0xff] }
 0x164   :  { %1668 = vmatpush1.msra.mxu1 %v1544_v5  ;;  %1359 = vmatmul.mubr.f32.gmra.mxu0 %v1804_v11  ;;  %v2005_v5 = vpop.f32.mrf.mxu0  ;;  %v1512_v11 = vld [vmem:[#allocation8 + $0x1f0] sm:$0xff] }
 0x165   :  { %1774 = vmatmul.mubr.msk.f32.gmra.mxu1 %vm665_vm0, %v1805_v12  ;;  %1592 = vmatprep.subr.mxu0 %v1479_v7  ;;  %v1514_v7 = vld [vmem:[#allocation8 + $0x200] sm:$0xff] }
 0x166   :  { %1669 = vmatprep.subr.mxu1 %v1543_v8  ;;  %1593 = vmatpush1.msra.mxu0 %v1478_v9  ;;  %v1513_v8 = vld [vmem:[#allocation8 + $0x1f8] sm:$0xff] }
 0x167   :  { %1670 = vmatpush1.msra.mxu1 %v1542_v10  ;;  %1594 = vmatprep.subr.mxu0 %v1477_v13  ;;  %v1577_v9 = vld [vmem:[#allocation8 + $0x3f8] sm:$0xff]  ;;  %v2007_v10 = vpop.f32.mrf.mxu1  ;;  %v1576_v13 = vld [vmem:[#allocation8 + $0x3f0] sm:$0xff] }
 0x168   :  { %1671 = vmatprep.subr.mxu1 %v1541_v14  ;;  %1595 = vmatpush1.msra.mxu0 %v1476_v15  ;;  %v2011_v14 = vshrl.u32 %v645_v2, 7  ;;  %v1511_v15 = vld [vmem:[#allocation8 + $0x1e8] sm:$0xff]  ;;  %v1492_v2 = vld [vmem:[#allocation8 + $0x150] sm:$0xff] }
 0x169   :  { %1672 = vmatpush1.msra.mxu1 %v1540_v16  ;;  %1596 = vmatprep.subr.mxu0 %v1475_v47  ;;  %v1575_v16 = vld [vmem:[#allocation8 + $0x3e8] sm:$0xff]  ;;  %v1510_v47 = vld [vmem:[#allocation8 + $0x1e0] sm:$0xff] }
 0x16a   :  { %1673 = vmatprep.subr.mxu1 %v1539_v17  ;;  %1597 = vmatpush1.msra.mxu0 %v1474_v18  ;;  %v1574_v17 = vld [vmem:[#allocation8 + $0x3e0] sm:$0xff]  ;;  %v1509_v18 = vld [vmem:[#allocation8 + $0x1d8] sm:$0xff] }
 0x16b   :  { %1674 = vmatpush1.msra.mxu1 %v1538_v19  ;;  %1598 = vmatprep.subr.mxu0 %v1473_v20  ;;  %v817_v19 = vpop.f32.mrf.mxu1  ;;  %v1508_v20 = vld [vmem:[#allocation8 + $0x1d0] sm:$0xff] }
 0x16c   :  { %1675 = vmatprep.subr.mxu1 %v1537_v21  ;;  %1599 = vmatpush1.msra.mxu0 %v1472_v22  ;;  %v651_v22 = vsub.s32 1, %v2011_v14 }
 0x16d   :  { %1676 = vmatpush1.msra.mxu1 %v1536_v23  ;;  %1600 = vmatprep.subr.mxu0 %v1471_v24  ;;  %v1507_v23 = vld [vmem:[#allocation8 + $0x1c8] sm:$0xff]  ;;  %v2014_v24 = vld [vmem:[#allocation7] sm:$0xf] }
 0x16e   :  { %1677 = vmatprep.subr.mxu1 %v1535_v25  ;;  %1601 = vmatpush1.msra.mxu0 %v1470_v26  ;;  %v1506_v26 = vld [vmem:[#allocation8 + $0x1c0] sm:$0xff] }
 0x16f   :  { %1678 = vmatpush1.msra.mxu1 %v1534_v27  ;;  %1602 = vmatprep.subr.mxu0 %v1469_v28  ;;  %v1505_v27 = vld [vmem:[#allocation8 + $0x1b8] sm:$0xff]  ;;  %v647_v28 = vsub.s32 0, %v2011_v14 }
 0x170   :  { %1679 = vmatprep.subr.mxu1 %v1533_v29  ;;  %1603 = vmatpush1.msra.mxu0 %v1468_v30  ;;  %v1504_v29 = vld [vmem:[#allocation8 + $0x1b0] sm:$0xff] }
 0x171   :  { %1680 = vmatpush1.msra.mxu1 %v1532_v31  ;;  %1604 = vmatprep.subr.mxu0 %v1467_v32  ;;  %v652_v31 = vrot.slane %v2014_v24, %v651_v22  ;;  %v1503_v32 = vld [vmem:[#allocation8 + $0x1a8] sm:$0xff] }
 0x172   :  { %1681 = vmatprep.subr.mxu1 %v1531_v33  ;;  %1605 = vmatpush1.msra.mxu0 %v1466_v34  ;;  %v1573_v33 = vld [vmem:[#allocation8 + $0x3d8] sm:$0xff]  ;;  %v1572_v34 = vld [vmem:[#allocation8 + $0x3d0] sm:$0xff] }
 0x173   :  { %1682 = vmatpush1.msra.mxu1 %v1530_v35  ;;  %1606 = vmatprep.subr.mxu0 %v1465_v36  ;;  %v1502_v36 = vld [vmem:[#allocation8 + $0x1a0] sm:$0xff] }
 0x174   :  { %1683 = vmatprep.subr.mxu1 %v1529_v37  ;;  %1607 = vmatpush1.msra.mxu0 %v1464_v38  ;;  %v1501_v37 = vld [vmem:[#allocation8 + $0x198] sm:$0xff]  ;;  %v1571_v38 = vld [vmem:[#allocation8 + $0x3c8] sm:$0xff] }
 0x175   :  { %1684 = vmatpush1.msra.mxu1 %v1528_v39  ;;  %1608 = vmatprep.subr.mxu0 %v1463_v40  ;;  %v648_v39 = vrot.slane %v2014_v24, %v647_v28 }
 0x176   :  { %1685 = vmatprep.subr.mxu1 %v1527_v41  ;;  %1609 = vmatpush1.msra.mxu0 %v1462_v42  ;;  %v1500_v41 = vld [vmem:[#allocation8 + $0x190] sm:$0xff]  ;;  %v741_v42 = vadd.f32 %v2005_v5, %v652_v31 }
 0x177   :  { %1686 = vmatpush1.msra.mxu1 %v1526_v43  ;;  %1610 = vmatprep.subr.mxu0 %v1461_v44  ;;  %v1499_v43 = vld [vmem:[#allocation8 + $0x188] sm:$0xff]  ;;  %v1570_v44 = vld [vmem:[#allocation8 + $0x3c0] sm:$0xff]  ;;  %v1564_v5 = vld [vmem:[#allocation8 + $0x390] sm:$0xff] }
 0x178   :  { %1687 = vmatprep.subr.mxu1 %v1525_v45  ;;  %1611 = vmatpush1.msra.mxu0 %v1460_v46  ;;  %v1498_v46 = vld [vmem:[#allocation8 + $0x180] sm:$0xff] }
 0x179   :  { %1688 = vmatpush1.msra.mxu1 %v1524_v48  ;;  %1612 = vmatprep.subr.mxu0 %v1459_v49  ;;  %v1497_v48 = vld [vmem:[#allocation8 + $0x178] sm:$0xff] }
 0x17a   :  { %1689 = vmatprep.subr.mxu1 %v1523_v50  ;;  %1613 = vmatpush1.msra.mxu0 %v1458_v51  ;;  %v1569_v49 = vld [vmem:[#allocation8 + $0x3b8] sm:$0xff]  ;;  %v1568_v50 = vld [vmem:[#allocation8 + $0x3b0] sm:$0xff]  ;;  %v739_v51 = vadd.f32 %v2003_v59, %v648_v39 }
 0x17b   :  { %1690 = vmatpush1.msra.mxu1 %v1522_v52  ;;  %1614 = vmatprep.subr.mxu0 %v1457_v53  ;;  %v1496_v53 = vld [vmem:[#allocation8 + $0x170] sm:$0xff] }
 0x17c   :  { %1691 = vmatprep.subr.mxu1 %v1521_v54  ;;  %1615 = vmatpush1.msra.mxu0 %v1456_v55  ;;  %v818_v54 = vadd.f32 %v817_v19, %v741_v42  ;;  %v1495_v55 = vld [vmem:[#allocation8 + $0x168] sm:$0xff]  ;;  %v816_v59 = vadd.f32 %v2007_v10, %v739_v51 }
 0x17d   :  { %1692 = vmatpush1.msra.mxu1 %v1520_v56  ;;  %1616 = vmatprep.subr.mxu0 %v1455_v57  ;;  %v1567_v56 = vld [vmem:[#allocation8 + $0x3a8] sm:$0xff]  ;;  %v1566_v57 = vld [vmem:[#allocation8 + $0x3a0] sm:$0xff] }
 0x17e   :  { %1693 = vmatprep.subr.mxu1 %v1519_v58  ;;  %1617 = vmatpush1.msra.mxu0 %v1454_v60  ;;  %v1494_v60 = vld [vmem:[#allocation8 + $0x160] sm:$0xff] }
 0x17f   :  { %1694 = vmatpush1.msra.mxu1 %v1518_v61  ;;  %1618 = vmatprep.subr.mxu0 %v1453_v62  ;;  %v2009_v12 = vpop.f32.mrf.mxu0 }
 0x180   :  { %1695 = vmatprep.subr.mxu1 %v1517_v63  ;;  %1619 = vmatpush1.msra.mxu0 %v1452_v0  ;;  %v1493_v63 = vld [vmem:[#allocation8 + $0x158] sm:$0xff]  ;;  %v745_v0 = vadd.f32 %v2009_v12, %v648_v39  ;;  %v1562_v12 = vld [vmem:[#allocation8 + $0x380] sm:$0xff] }
 0x181   :  { %1696 = vmatpush1.msra.mxu1 %v1516_v1  ;;  %1620 = vmatprep.subr.mxu0 %v1451_v3  ;;  %v746_v21 = vpop.f32.mrf.mxu0  ;;  %v1565_v3 = vld [vmem:[#allocation8 + $0x398] sm:$0xff] }
 0x182   :  { %1697 = vmatprep.subr.mxu1 %v1515_v4  ;;  %1621 = vmatpush1.msra.mxu0 %v1450_v6  ;;  %v2016_v25 = vpop.f32.mrf.mxu1  ;;  %v747_v61 = vadd.f32 %v746_v21, %v652_v31  ;;  %v1491_v4 = vld [vmem:[#allocation8 + $0x148] sm:$0xff] }
 0x183   :  { %1698 = vmatpush1.msra.mxu1 %v1514_v7  ;;  %1622 = vmatprep.subr.mxu0 %v1513_v8  ;;  %v1490_v8 = vld [vmem:[#allocation8 + $0x140] sm:$0xff] }
 0x184   :  { %1699 = vmatprep.subr.mxu1 %v1577_v9  ;;  %1623 = vmatpush2.msra.mxu0 %v1512_v11  ;;  %v823_v35 = vpop.f32.mrf.mxu1  ;;  %v1489_v11 = vld [vmem:[#allocation8 + $0x138] sm:$0xff] }
 0x185   :  { %1700 = vmatpush2.msra.mxu1 %v1576_v13  ;;  %1624 = vmatprep.subr.mxu0 %v1511_v15  ;;  %v1563_v13 = vld [vmem:[#allocation8 + $0x388] sm:$0xff]  ;;  %v824_v15 = vadd.f32 %v823_v35, %v747_v61 }
 0x186   :  { %1701 = vmatprep.subr.mxu1 %v1575_v16  ;;  %1625 = vmatpush2.msra.mxu0 %v1510_v47  ;;  %v892_v30 = vpop.f32.mrf.mxu0  ;;  %v1561_v16 = vld [vmem:[#allocation8 + $0x378] sm:$0xff]  ;;  %v1560_v47 = vld [vmem:[#allocation8 + $0x370] sm:$0xff] }
 0x187   :  { %1702 = vmatpush2.msra.mxu1 %v1574_v17  ;;  %1626 = vmatprep.subr.mxu0 %v1509_v18  ;;  %v893_v6 = vadd.f32 %v892_v30, %v816_v59  ;;  %v822_v17 = vadd.f32 %v2016_v25, %v745_v0  ;;  %v1488_v18 = vld [vmem:[#allocation8 + $0x130] sm:$0xff] }
 0x188   :  { %1627 = vmatpush2.msra.mxu0 %v1508_v20  ;;  %1703 = vmatprep.subr.mxu1 %v1573_v33  ;;  %v894_v40 = vpop.f32.mrf.mxu0  ;;  %v2026_v45 = vpop.f32.mrf.mxu1  ;;  %v1559_v20 = vld [vmem:[#allocation8 + $0x368] sm:$0xff]  ;;  %v1485_v33 = vld [vmem:[#allocation8 + $0x118] sm:$0xff] }
 0x189   :  { %1628 = vmatprep.subr.mxu0 %v1507_v23  ;;  %1704 = vmatpush2.msra.mxu1 %v1572_v34  ;;  %v895_v62 = vadd.f32 %v894_v40, %v818_v54  ;;  %v1557_v34 = vld [vmem:[#allocation8 + $0x358] sm:$0xff]  ;;  %v1483_v40 = vld [vmem:[#allocation8 + $0x108] sm:$0xff]  ;;  %v1550_v54 = vld [vmem:[#allocation8 + $0x320] sm:$0xff] }
 0x18a   :  { %1629 = vmatpush2.msra.mxu0 %v1506_v26  ;;  %1705 = vmatprep.subr.mxu1 %v1571_v38  ;;  %v971_v58 = vpop.f32.mrf.mxu1  ;;  %v1487_v26 = vld [vmem:[#allocation8 + $0x128] sm:$0xff]  ;;  %v1556_v38 = vld [vmem:[#allocation8 + $0x350] sm:$0xff] }
 0x18b   :  { %1630 = vmatprep.subr.mxu0 %v1505_v27  ;;  %1706 = vmatpush2.msra.mxu1 %v1570_v44  ;;  %v972_v10 = vadd.f32 %v971_v58, %v895_v62  ;;  %v1558_v27 = vld [vmem:[#allocation8 + $0x360] sm:$0xff]  ;;  %v1555_v44 = vld [vmem:[#allocation8 + $0x348] sm:$0xff] }
 0x18c   :  { %1631 = vmatpush2.msra.mxu0 %v1504_v29  ;;  %v898_v52 = vpop.f32.mrf.mxu0  ;;  %1707 = vmatprep.subr.mxu1 %v1569_v49  ;;  %v970_v29 = vadd.f32 %v2026_v45, %v893_v6  ;;  %v1547_v58 = vld [vmem:[#allocation8 + $0x308] sm:$0xff] }
 0x18d   :  { %1632 = vmatprep.subr.mxu0 %v1503_v32  ;;  %1708 = vmatpush2.msra.mxu1 %v1568_v50  ;;  %v899_v30 = vadd.f32 %v898_v52, %v822_v17  ;;  %v1486_v32 = vld [vmem:[#allocation8 + $0x120] sm:$0xff]  ;;  %v1553_v50 = vld [vmem:[#allocation8 + $0x338] sm:$0xff]  ;;  %v1552_v52 = vld [vmem:[#allocation8 + $0x330] sm:$0xff] }
 0x18e   :  { %1633 = vmatpush2.msra.mxu0 %v1502_v36  ;;  %1709 = vmatprep.subr.mxu1 %v1567_v56  ;;  %v900_v1 = vpop.f32.mrf.mxu0  ;;  %v1549_v56 = vld [vmem:[#allocation8 + $0x318] sm:$0xff] }
 0x18f   :  { %1634 = vmatprep.subr.mxu0 %v1501_v37  ;;  %1710 = vmatpush2.msra.mxu1 %v1566_v57  ;;  %v975_v7 = vpop.f32.mrf.mxu1  ;;  %v901_v21 = vadd.f32 %v900_v1, %v824_v15  ;;  %v1484_v37 = vld [vmem:[#allocation8 + $0x110] sm:$0xff]  ;;  %v655_v1 = vsub.s32 2, %v2011_v14 }
 0x190   :  { %1635 = vmatpush2.msra.mxu0 %v1500_v41  ;;  %1711 = vmatprep.subr.mxu1 %v1565_v3  ;;  %v976_v41 = vadd.f32 %v975_v7, %v899_v30  ;;  %v1548_v57 = vld [vmem:[#allocation8 + $0x310] sm:$0xff]  ;;  %v659_v3 = vsub.s32 3, %v2011_v14 }
 0x191   :  { %1636 = vmatprep.subr.mxu0 %v1499_v43  ;;  %1712 = vmatpush2.msra.mxu1 %v1564_v5  ;;  %v977_v31 = vpop.f32.mrf.mxu1  ;;  %v1482_v43 = vld [vmem:[#allocation8 + $0x100] sm:$0xff]  ;;  %v656_v5 = vrot.slane %v2014_v24, %v655_v1 }
 0x192   :  { %1637 = vmatpush2.msra.mxu0 %v1498_v46  ;;  %1713 = vmatprep.subr.mxu1 %v1563_v13  ;;  %v978_v39 = vadd.f32 %v977_v31, %v901_v21  ;;  %v1554_v46 = vld [vmem:[#allocation8 + $0x340] sm:$0xff]  ;;  %v660_v7 = vrot.slane %v2014_v24, %v659_v3 }
 0x193   :  { %1638 = vmatprep.subr.mxu0 %v1497_v48  ;;  %1714 = vmatpush2.msra.mxu1 %v1562_v12 }
 0x194   :  { %1639 = vmatpush2.msra.mxu0 %v1496_v53  ;;  %1715 = vmatprep.subr.mxu1 %v1561_v16  ;;  %v1551_v53 = vld [vmem:[#allocation8 + $0x328] sm:$0xff] }
 0x195   :  { %1640 = vmatprep.subr.mxu0 %v1495_v55  ;;  %1716 = vmatpush2.msra.mxu1 %v1560_v47 }
 0x196   :  { %1641 = vmatpush2.msra.mxu0 %v1494_v60  ;;  %1717 = vmatprep.subr.mxu1 %v1559_v20  ;;  %v1546_v60 = vld [vmem:[#allocation8 + $0x300] sm:$0xff] }
 0x197   :  { %1642 = vmatprep.subr.mxu0 %v1493_v63  ;;  %1718 = vmatpush2.msra.mxu1 %v1558_v27 }
 0x198   :  { %v1046_v9 = vpop.f32.mrf.mxu0  ;;  %1643 = vmatpush2.msra.mxu0 %v1492_v2  ;;  %1719 = vmatprep.subr.mxu1 %v1557_v34 }
 0x199   :  { %1644 = vmatprep.subr.mxu0 %v1491_v4  ;;  %v1047_v35 = vadd.f32 %v1046_v9, %v970_v29  ;;  %1720 = vmatpush2.msra.mxu1 %v1556_v38 }
 0x19a   :  { %v1048_v19 = vpop.f32.mrf.mxu0  ;;  %1645 = vmatpush2.msra.mxu0 %v1490_v8  ;;  %1721 = vmatprep.subr.mxu1 %v1555_v44 }
 0x19b   :  { %v1049_v23 = vadd.f32 %v1048_v19, %v972_v10  ;;  %1646 = vmatprep.subr.mxu0 %v1489_v11  ;;  %v1442_v48 = vmax.f32 %v1047_v35, 0.0  ;;  %1722 = vmatpush2.msra.mxu1 %v1554_v46 }
 0x19c   :  { %1647 = vmatpush2.msra.mxu0 %v1488_v18  ;;  %1723 = vmatprep.subr.mxu1 %v1553_v50 }
 0x19d   :  { %v1443_v25 = vmax.f32 %v1049_v23, 0.0  ;;  %1648 = vmatprep.subr.mxu0 %v1487_v26  ;;  %v1052_v36 = vpop.f32.mrf.mxu0  ;;  %1724 = vmatpush2.msra.mxu1 %v1552_v52 }
 0x19e   :  { %1649 = vmatpush2.msra.mxu0 %v1486_v32  ;;  %v1053_v49 = vadd.f32 %v1052_v36, %v976_v41  ;;  %1725 = vmatprep.subr.mxu1 %v1551_v53 }
 0x19f   :  { %1654 = vmatprep.mubr.f32.mxu0 %v1443_v25  ;;  %1650 = vmatprep.subr.mxu0 %v1485_v33  ;;  %v1054_v42 = vpop.f32.mrf.mxu0 }
 0x1a0   :  { %1651 = vmatpush2.msra.mxu0 %v1484_v37  ;;  %v1055_v45 = vadd.f32 %v1054_v42, %v978_v39  ;;  %v1446_v55 = vmax.f32 %v1053_v49, 0.0  ;;  %1726 = vmatpush2.msra.mxu1 %v1550_v54 }
 0x1a1   :  { %1652 = vmatprep.subr.mxu0 %v1483_v40  ;;  %1727 = vmatprep.subr.mxu1 %v1549_v56 }
 0x1a2   :  { %v1447_v51 = vmax.f32 %v1055_v45, 0.0  ;;  %1653 = vmatpush2.msra.mxu0 %v1482_v43  ;;  %1728 = vmatpush2.msra.mxu1 %v1548_v57 }
 0x1a3   :  { %1655 = vmatmul.mubr.f32.vlgmr.msra.gmra.mxu0 %v1442_v48  ;;  %1729 = vmatprep.subr.mxu1 %v1547_v58  ;;  %v1578_v48 = vld [vmem:[#allocation10] sm:$0x3] }
 0x1a4   :  { %1660 = vmatprep.mubr.f32.mxu0 %v1447_v51  ;;  %1730 = vmatpush2.msra.mxu1 %v1546_v60  ;;  %v1583_v50 = vrot.slane %v1578_v48, %v647_v28  ;;  %v1587_v51 = vrot.slane %v1578_v48, %v651_v22 }
 0x1a7   :  { %1661 = vmatmul.mubr.f32.gmra.mxu0 %v1446_v55 }
 0x1cd   :  { %v1123_v61 = vpop.f32.mrf.mxu1 }
 0x1ce   :  { %v1124_v11 = vadd.f32 %v1123_v61, %v656_v5 }
 0x1cf   :  { %v1125_v62 = vpop.f32.mrf.mxu1 }
 0x1d0   :  { %v1126_v15 = vadd.f32 %v1125_v62, %v660_v7 }
 0x1db   :  { %v1200_v2 = vpop.f32.mrf.mxu0 }
 0x1dc   :  { %v1201_v10 = vadd.f32 %v1200_v2, %v1124_v11 }
 0x1dd   :  { %v1202_v6 = vpop.f32.mrf.mxu0 }
 0x1de   :  { %v1203_v47 = vadd.f32 %v1202_v6, %v1126_v15 }
 0x20a   :  { %v1129_v63 = vpop.f32.mrf.mxu1 }
 0x20b   :  { %v1130_v13 = vadd.f32 %v1129_v63, %v656_v5 }
 0x20c   :  { %v1131_v59 = vpop.f32.mrf.mxu1 }
 0x20d   :  { %v1132_v17 = vadd.f32 %v1131_v59, %v660_v7 }
 0x20e   :  { %v1206_v8 = vpop.f32.mrf.mxu0 }
 0x20f   :  { %v1207_v18 = vadd.f32 %v1206_v8, %v1130_v13 }
 0x210   :  { %v1277_v0 = vpop.f32.mrf.mxu1  ;;  %v1208_v12 = vpop.f32.mrf.mxu0 }
 0x211   :  { %v1278_v19 = vadd.f32 %v1277_v0, %v1201_v10  ;;  %v1209_v30 = vadd.f32 %v1208_v12, %v1132_v17 }
 0x212   :  { %v1279_v4 = vpop.f32.mrf.mxu1 }
 0x213   :  { %v1280_v23 = vadd.f32 %v1279_v4, %v1203_v47 }
 0x215   :  { %v1283_v9 = vpop.f32.mrf.mxu1 }
 0x216   :  { %v1284_v24 = vadd.f32 %v1283_v9, %v1207_v18 }
 0x217   :  { %v1285_v16 = vpop.f32.mrf.mxu1 }
 0x218   :  { %v1286_v34 = vadd.f32 %v1285_v16, %v1209_v30 }
 0x220   :  { %v1354_v20 = vpop.f32.mrf.mxu0 }
 0x221   :  { %v1431_v21 = vpop.f32.mrf.mxu1  ;;  %v1355_v26 = vadd.f32 %v1354_v20, %v1278_v19 }
 0x222   :  { %v1356_v27 = vpop.f32.mrf.mxu0 }
 0x223   :  { %v1433_v29 = vpop.f32.mrf.mxu1  ;;  %v1357_v31 = vadd.f32 %v1356_v27, %v1280_v23  ;;  %v1432_v32 = vadd.f32 %v1431_v21, %v1355_v26 }
 0x224   :  { %v1360_v25 = vpop.f32.mrf.mxu0 }
 0x225   :  { %v1437_v33 = vpop.f32.mrf.mxu1  ;;  %v1434_v35 = vadd.f32 %v1433_v29, %v1357_v31  ;;  %v1361_v36 = vadd.f32 %v1360_v25, %v1284_v24  ;;  %v1444_v40 = vmax.f32 %v1432_v32, 0.0 }
 0x226   :  { %v1362_v37 = vpop.f32.mrf.mxu0 }
 0x227   :  { %v1445_v38 = vmax.f32 %v1434_v35, 0.0  ;;  %v1363_v39 = vadd.f32 %v1362_v37, %v1286_v34  ;;  %v1438_v41 = vadd.f32 %v1437_v33, %v1361_v36  ;;  %v1439_v42 = vpop.f32.mrf.mxu1 }
 0x229   :  { %v1440_v43 = vadd.f32 %v1439_v42, %v1363_v39  ;;  %1731 = vmatprep.mubr.f32.mxu1 %v1445_v38  ;;  %v1448_v45 = vmax.f32 %v1438_v41, 0.0 }
 0x22a   :  { %1732 = vmatmul.mubr.f32.vlgmr.msra.gmra.mxu1 %v1444_v40 }
 0x22b   :  { %v1449_v44 = vmax.f32 %v1440_v43, 0.0 }
 0x22d   :  { %1737 = vmatprep.mubr.f32.mxu1 %v1449_v44 }
 0x22e   :  { %1738 = vmatmul.mubr.f32.gmra.mxu1 %v1448_v45 }
 0x263   :  { %v1656_v46 = vpop.f32.mrf.mxu0 }
 0x264   :  { %v1657_v53 = vadd.f32 %v1656_v46, %v1583_v50 }
 0x265   :  { %v1658_v49 = vpop.f32.mrf.mxu0 }
 0x266   :  { %v1659_v55 = vadd.f32 %v1658_v49, %v1587_v51 }
 0x267   :  { %v1662_v52 = vpop.f32.mrf.mxu0 }
 0x268   :  { %v1663_v60 = vadd.f32 %v1662_v52, %v1583_v50 }
 0x269   :  { %v1664_v57 = vpop.f32.mrf.mxu0 }
 0x26a   :  { %v1665_v59 = vadd.f32 %v1664_v57, %v1587_v51 }
 0x2ea   :  { %v1733_v54 = vpop.f32.mrf.mxu1 }
 0x2eb   :  { %v1734_v56 = vadd.f32 %v1733_v54, %v1657_v53 }
 0x2ec   :  { %v1735_v58 = vpop.f32.mrf.mxu1 }
 0x2ed   :  { %v1744_v61 = vmax.f32 %v1734_v56, 0.0  ;;  %v1736_v62 = vadd.f32 %v1735_v58, %v1659_v55 }
 0x2ee   :  { %v1739_v63 = vpop.f32.mrf.mxu1 }
 0x2ef   :  { %1748 = vst [vmem:[#allocation11] sm:$0xff] %v1744_v61  ;;  %v1745_v0 = vmax.f32 %v1736_v62, 0.0  ;;  %v1740_v1 = vadd.f32 %v1739_v63, %v1663_v60 }
 0x2f0   :  { %v1741_v2 = vpop.f32.mrf.mxu1 }
 0x2f1   :  { %1749 = vst [vmem:[#allocation11 + $0x8] sm:$0xff] %v1745_v0  ;;  %v1746_v14 = vmax.f32 %v1740_v1, 0.0  ;;  %v1742_v22 = vadd.f32 %v1741_v2, %v1665_v59 }
 0x2f3   :  { %1750 = vst [vmem:[#allocation11 + $0x10] sm:$0xff] %v1746_v14  ;;  %v1747_v28 = vmax.f32 %v1742_v22, 0.0 }
 0x2f5   :  { %1751 = vst [vmem:[#allocation11 + $0x18] sm:$0xff] %v1747_v28 }
 0x2f6   :  { %1917 = shalt.err (!%p1914_p1)
}
 0x2f7   :  { %1763 = dma.vmem_to_hbm [thread:$0]  %s1758_s4, 512, %s2052_s5, [#allocation4], %s1938_s28, %s1938_s28, %s1939_s29  }
 0x2f8   :  { %1932 = dma.done.wait [#allocation4], 512  }
 0x2f9   :  { %1933 = vsyncadd [#allocation4], 4294966784 }
 0x2fa   :  { %1767 = vsyncpa [#allocation3], 1 }
 0x2fb   :  { %1768 = vsyncpa [#allocation6], 1 }
 0x2fc   :  { %1769 = vsyncpa [#allocation9], 1 }
 0x2fd   :  { %1770 = vsyncpa [#allocation4], 1 }

</bundles_post_ra>
